<compile_context>
chip_gen: v5e
topology: v5e:2x2
jax: 0.10.0
libtpu: 0.0.40
codegen_flags: <defaults>
</compile_context>

<pallas_src>
import functools

import jax
import jax.numpy as jnp
from jax.experimental import pallas as pl
from jax.experimental.pallas import tpu as pltpu


# ----------------------------------------------------------------------------
# Tiling helper: use the target tile when it divides the dim, else full dim
# (small toy dims always fall back to a single full block, which is legal).
# ----------------------------------------------------------------------------
def _pick_tile(dim, target):
    return target if dim % target == 0 else dim


# ----------------------------------------------------------------------------
# Pallas kernels
# ----------------------------------------------------------------------------
def _linear_kernel(x_ref, w_ref, b_ref, o_ref, acc_ref, *, activation):
    """Tiled matmul: grid=(M/tm, N/tn, K/tk), f32 accumulator, bias (+GELU)."""
    k = pl.program_id(2)

    @pl.when(k == 0)
    def _():
        acc_ref[...] = jnp.zeros_like(acc_ref)

    acc_ref[...] += jnp.dot(
        x_ref[...], w_ref[...], preferred_element_type=jnp.float32
    )

    @pl.when(k == pl.num_programs(2) - 1)
    def _():
        out = acc_ref[...] + b_ref[...].astype(jnp.float32)
        if activation == "gelu":
            # TODO(synk): PyTorch BERT may use exact erf GELU; tanh approx here.
            out = jax.nn.gelu(out, approximate=True)
        o_ref[...] = out.astype(o_ref.dtype)


def _linear_ln_kernel(*refs, activation, has_residual):
    """Tiled matmul with fused epilogue: bias -> [GELU] -> [+residual] -> LN.

    grid=(M/tm, K/tk); full output row (N=hidden) per tile so LayerNorm can
    reduce over the whole hidden dimension in-register.
    """
    if has_residual:
        x_ref, w_ref, b_ref, r_ref, g_ref, bb_ref, o_ref, acc_ref = refs
    else:
        x_ref, w_ref, b_ref, g_ref, bb_ref, o_ref, acc_ref = refs
        r_ref = None
    k = pl.program_id(1)

    @pl.when(k == 0)
    def _():
        acc_ref[...] = jnp.zeros_like(acc_ref)

    acc_ref[...] += jnp.dot(
        x_ref[...], w_ref[...], preferred_element_type=jnp.float32
    )

    @pl.when(k == pl.num_programs(1) - 1)
    def _():
        h = acc_ref[...] + b_ref[...].astype(jnp.float32)
        if activation == "gelu":
            h = jax.nn.gelu(h, approximate=True)
        if has_residual:
            h = h + r_ref[...].astype(jnp.float32)
        mean = jnp.mean(h, axis=-1, keepdims=True)
        var = jnp.mean((h - mean) ** 2, axis=-1, keepdims=True)
        inv = jax.lax.rsqrt(var + 1e-12)
        o_ref[...] = (
            (h - mean) * inv * g_ref[...].astype(jnp.float32)
            + bb_ref[...].astype(jnp.float32)
        ).astype(o_ref.dtype)


def _layernorm_kernel(x_ref, g_ref, b_ref, o_ref):
    """Plain LayerNorm (no residual stream), f32 statistics."""
    x = x_ref[...].astype(jnp.float32)
    mean = jnp.mean(x, axis=-1, keepdims=True)
    var = jnp.mean((x - mean) ** 2, axis=-1, keepdims=True)
    inv = jax.lax.rsqrt(var + 1e-12)
    o_ref[...] = (
        (x - mean) * inv * g_ref[...].astype(jnp.float32)
        + b_ref[...].astype(jnp.float32)
    ).astype(o_ref.dtype)


def _attention_kernel(qkv_ref, bias_ref, o_ref, *, scale, heads, hidden):
    """One batch element. qkv block is (1, S, 3*hidden) bf16 (packed Q|K|V),
    bias block is (1, 1, S) additive mask (broadcast over rows in-kernel).
    Output written directly in (1, S, hidden) layout (lane-dense store)."""
    # TODO(synk): for long sequences (S >= 512) convert to a flash-style
    # online-softmax with a kv grid axis instead of full (S, S) scores.
    dh = hidden // heads
    qkv = qkv_ref[0]                              # (S, 3*hidden) bf16
    bias = bias_ref[0].astype(jnp.float32)        # (1, S)
    ctx_heads = []
    for h in range(heads):                        # static unrolled head loop
        q = (qkv[:, h * dh:(h + 1) * dh].astype(jnp.float32) * scale).astype(
            jnp.bfloat16
        )
        k = qkv[:, hidden + h * dh: hidden + (h + 1) * dh]
        v = qkv[:, 2 * hidden + h * dh: 2 * hidden + (h + 1) * dh]
        # scores / softmax in f32; bf16 operands on the MXU.
        s = jax.lax.dot_general(
            q, k, (((1,), (1,)), ((), ())), preferred_element_type=jnp.float32
        )
        s = s + bias                              # (1,S) -> (S,S) broadcast
        m = jnp.max(s, axis=-1, keepdims=True)
        p = jnp.exp(s - m)
        l = jnp.sum(p, axis=-1, keepdims=True)
        p = p * pl.reciprocal(l, approx=True)
        ctx_heads.append(
            jnp.dot(p.astype(v.dtype), v, preferred_element_type=jnp.float32)
        )
    o_ref[0] = jnp.concatenate(ctx_heads, axis=-1).astype(o_ref.dtype)


# ----------------------------------------------------------------------------
# Pallas wrappers
# ----------------------------------------------------------------------------
def pallas_linear(x, w, b, activation=None, out_dtype=None,
                  tm=256, tn=512, tk=512):
    M, K = x.shape
    N = w.shape[1]
    out_dtype = out_dtype or jnp.bfloat16
    tm, tn, tk = _pick_tile(M, tm), _pick_tile(N, tn), _pick_tile(K, tk)
    x = x.astype(jnp.bfloat16)
    w = w.astype(jnp.bfloat16)
    b = b.astype(jnp.float32).reshape(1, N)
    return pl.pallas_call(
        functools.partial(_linear_kernel, activation=activation),
        out_shape=jax.ShapeDtypeStruct((M, N), out_dtype),
        grid=(M // tm, N // tn, K // tk),
        in_specs=[
            pl.BlockSpec((tm, tk), lambda i, j, k: (i, k)),
            pl.BlockSpec((tk, tn), lambda i, j, k: (k, j)),
            pl.BlockSpec((1, tn), lambda i, j, k: (0, j)),   # resident over M,K
        ],
        out_specs=pl.BlockSpec((tm, tn), lambda i, j, k: (i, j)),
        scratch_shapes=[pltpu.VMEM((tm, tn), jnp.float32)],
        compiler_params=pltpu.CompilerParams(
            dimension_semantics=("parallel", "parallel", "arbitrary")
        ),
    )(x, w, b)


def pallas_linear_layernorm(x, w, b, gamma, beta, residual=None,
                            activation=None, out_dtype=None, tm=256, tk=512):
    """matmul + bias (+GELU) (+residual) + LayerNorm, fused in one kernel."""
    M, K = x.shape
    N = w.shape[1]                       # full hidden width per tile (LN row)
    out_dtype = out_dtype or jnp.bfloat16
    tm, tk = _pick_tile(M, tm), _pick_tile(K, tk)
    x = x.astype(jnp.bfloat16)
    w = w.astype(jnp.bfloat16)
    b = b.astype(jnp.float32).reshape(1, N)
    gamma = gamma.astype(jnp.float32).reshape(1, N)
    beta = beta.astype(jnp.float32).reshape(1, N)

    in_specs = [
        pl.BlockSpec((tm, tk), lambda i, k: (i, k)),
        pl.BlockSpec((tk, N), lambda i, k: (k, 0)),
        pl.BlockSpec((1, N), lambda i, k: (0, 0)),
    ]
    args = [x, w, b]
    if residual is not None:
        in_specs.append(pl.BlockSpec((tm, N), lambda i, k: (i, 0)))
        args.append(residual.astype(jnp.bfloat16))
    in_specs += [
        pl.BlockSpec((1, N), lambda i, k: (0, 0)),
        pl.BlockSpec((1, N), lambda i, k: (0, 0)),
    ]
    args += [gamma, beta]

    return pl.pallas_call(
        functools.partial(
            _linear_ln_kernel,
            activation=activation,
            has_residual=residual is not None,
        ),
        out_shape=jax.ShapeDtypeStruct((M, N), out_dtype),
        grid=(M // tm, K // tk),
        in_specs=in_specs,
        out_specs=pl.BlockSpec((tm, N), lambda i, k: (i, 0)),
        scratch_shapes=[pltpu.VMEM((tm, N), jnp.float32)],
        compiler_params=pltpu.CompilerParams(
            dimension_semantics=("parallel", "arbitrary")
        ),
    )(*args)


def pallas_layernorm(x, gamma, beta, out_dtype=None, tm=256):
    M, H = x.shape
    out_dtype = out_dtype or jnp.bfloat16
    tm = _pick_tile(M, tm)
    return pl.pallas_call(
        _layernorm_kernel,
        out_shape=jax.ShapeDtypeStruct((M, H), out_dtype),
        grid=(M // tm,),
        in_specs=[
            pl.BlockSpec((tm, H), lambda i: (i, 0)),
            pl.BlockSpec((1, H), lambda i: (0, 0)),
            pl.BlockSpec((1, H), lambda i: (0, 0)),
        ],
        out_specs=pl.BlockSpec((tm, H), lambda i: (i, 0)),
        compiler_params=pltpu.CompilerParams(
            dimension_semantics=("parallel",)
        ),
    )(
        x,
        gamma.astype(jnp.float32).reshape(1, H),
        beta.astype(jnp.float32).reshape(1, H),
    )


def pallas_attention(qkv, mask_bias, heads, scale):
    """qkv: (B, S, 3*hidden) bf16 packed [Q|K|V]; mask_bias: (B, 1, S) f32."""
    B, S, three_hidden = qkv.shape
    hidden = three_hidden // 3
    return pl.pallas_call(
        functools.partial(
            _attention_kernel, scale=scale, heads=heads, hidden=hidden
        ),
        out_shape=jax.ShapeDtypeStruct((B, S, hidden), jnp.bfloat16),
        grid=(B,),
        in_specs=[
            pl.BlockSpec((1, S, three_hidden), lambda b: (b, 0, 0)),
            pl.BlockSpec((1, 1, S), lambda b: (b, 0, 0)),
        ],
        out_specs=pl.BlockSpec((1, S, hidden), lambda b: (b, 0, 0)),
        compiler_params=pltpu.CompilerParams(
            dimension_semantics=("parallel",)
        ),
    )(qkv, mask_bias)


# ----------------------------------------------------------------------------
# Deterministic parameter init (synthetic BERT config for byteBERT)
# ----------------------------------------------------------------------------
def init_params(key, vocab, hidden, layers, heads, inter, max_pos):
    keys = iter(jax.random.split(key, 8 + 8 * layers))

    def dense(kin, kout):
        w = jax.random.normal(next(keys), (kin, kout), jnp.float32) * 0.02
        return (w, jnp.zeros((kout,), jnp.float32))

    def ln(dim):
        return (jnp.ones((dim,), jnp.float32), jnp.zeros((dim,), jnp.float32))

    params = {
        "tok_emb": jax.random.normal(next(keys), (vocab, hidden), jnp.float32) * 0.02,
        "pos_emb": jax.random.normal(next(keys), (max_pos, hidden), jnp.float32) * 0.02,
        "emb_ln": ln(hidden),
        "layers": [],
        "mlm_dense": dense(hidden, hidden),
        "mlm_ln": ln(hidden),
        "mlm_decoder": dense(hidden, vocab),
    }
    for _ in range(layers):
        params["layers"].append(
            {
                "qkv": dense(hidden, 3 * hidden),   # fused Q|K|V projection
                "o": dense(hidden, hidden),
                "attn_ln": ln(hidden),
                "ff1": dense(hidden, inter),
                "ff2": dense(inter, hidden),
                "ff_ln": ln(hidden),
            }
        )
    return params


# ----------------------------------------------------------------------------
# Forward pass (matches BERTModelForPretrain.forward: returns MLM logits)
# ----------------------------------------------------------------------------
def bert_forward(params, input_ids, attention_mask, heads):
    B, S = input_ids.shape
    hidden = params["tok_emb"].shape[1]
    vocab = params["mlm_decoder"][0].shape[1]
    dh = hidden // heads
    scale = 1.0 / float(dh) ** 0.5

    # Embeddings (gather is glue) + LayerNorm (Pallas); activations -> bf16.
    emb = jnp.take(params["tok_emb"], input_ids, axis=0) + params["pos_emb"][:S][None]
    x = pallas_layernorm(emb.reshape(B * S, hidden), *params["emb_ln"])

    # Rank-1 additive attention bias (B, 1, S): broadcast happens in-kernel.
    mask_bias = ((1.0 - attention_mask.astype(jnp.float32)) * -1e9).reshape(B, 1, S)

    for lp in params["layers"]:
        # Fused QKV projection: x is read from HBM once for all three.
        qkv = pallas_linear(x, *lp["qkv"])                      # (B*S, 3*hidden)
        ctx = pallas_attention(
            qkv.reshape(B, S, 3 * hidden), mask_bias, heads, scale
        )                                                       # (B, S, hidden)
        ctx = ctx.reshape(B * S, hidden)

        # Output projection fused with residual add + LayerNorm.
        x = pallas_linear_layernorm(ctx, *lp["o"], *lp["attn_ln"], residual=x)

        # Feed-forward: dense+GELU, then dense fused with residual + LayerNorm.
        ff = pallas_linear(x, *lp["ff1"], activation="gelu")
        x = pallas_linear_layernorm(ff, *lp["ff2"], *lp["ff_ln"], residual=x)

    # MLM head: dense + GELU + LayerNorm fused, then vocab decoder (N-tiled).
    # TODO(synk): pooled_output / per-layer encoded_layers are computed inside
    # the original bert_models.BERT but unused by this wrapper's return value.
    h = pallas_linear_layernorm(
        x, *params["mlm_dense"], *params["mlm_ln"], activation="gelu"
    )
    logits = pallas_linear(h, *params["mlm_decoder"], out_dtype=jnp.float32)
    return logits.reshape(B, S, vocab)


# ----------------------------------------------------------------------------
if __name__ == "__main__":
    cfg = dict(vocab=256, hidden=32, layers=2, heads=4, inter=64, max_pos=16)
    B, S = 2, 8

    key = jax.random.PRNGKey(0)
    pkey, ikey = jax.random.split(key)
    params = init_params(pkey, **cfg)

    input_ids = jax.random.randint(ikey, (B, S), 0, cfg["vocab"], dtype=jnp.int32)
    attention_mask = jnp.ones((B, S), jnp.int32).at[:, -2:].set(0)  # pad last 2

    fwd = jax.jit(functools.partial(bert_forward, heads=cfg["heads"]))
    logits = fwd(params, input_ids, attention_mask)
    jax.block_until_ready(logits)

    assert logits.shape == (B, S, cfg["vocab"]), logits.shape
    assert bool(jnp.all(jnp.isfinite(logits)))
    print("KERNEL_OK")
</pallas_src>

<mosaic_0001>
module attributes {stable_mosaic.version = 11 : i64} {
  func.func @_linear_kernel(%arg0: i32, %arg1: i32, %arg2: i32, %arg3: memref<16x32xbf16, #tpu.memory_space<vmem>>, %arg4: memref<32x96xbf16, #tpu.memory_space<vmem>>, %arg5: memref<1x96xf32, #tpu.memory_space<vmem>>, %arg6: memref<16x96xbf16, #tpu.memory_space<vmem>>, %arg7: memref<16x96xf32, #tpu.memory_space<vmem>>) attributes {dimension_semantics = [#tpu.dimension_semantics<parallel>, #tpu.dimension_semantics<parallel>, #tpu.dimension_semantics<arbitrary>], iteration_bounds = array<i64: 1, 1, 1>, scalar_prefetch = 0 : i64, scratch_operands = 1 : i64, tpu.core_type = #tpu.core_type<tc>, window_params = [{transform_indices = @transform_0, window_bounds = array<i64: 16, 32>}, {transform_indices = @transform_1, window_bounds = array<i64: 32, 96>}, {transform_indices = @transform_2, window_bounds = array<i64: 1, 96>}, {transform_indices = @transform_3, window_bounds = array<i64: 16, 96>}]} {
    %c0_i32 = arith.constant 0 : i32
    %0 = arith.cmpi eq, %arg2, %c0_i32 : i32
    %1 = arith.extui %0 : i1 to i32
    %c0_i32_0 = arith.constant 0 : i32
    %2 = arith.cmpi ne, %1, %c0_i32_0 : i32
    scf.if %2 {
      %cst_10 = arith.constant 0.000000e+00 : f32
      %12 = vector.broadcast %cst_10 : f32 to vector<16x96xf32>
      %c0_11 = arith.constant 0 : index
      %c0_12 = arith.constant 0 : index
      %13 = vector.load %arg7[%c0_11, %c0_12] : memref<16x96xf32, #tpu.memory_space<vmem>>, vector<16x96xf32>
      tpu.vector_store %arg7[%c0_11, %c0_12], %12 {strides = array<i32>} : memref<16x96xf32, #tpu.memory_space<vmem>>, vector<16x96xf32>,
    } else {
    }
    %c0 = arith.constant 0 : index
    %c0_1 = arith.constant 0 : index
    %3 = vector.load %arg7[%c0, %c0_1] : memref<16x96xf32, #tpu.memory_space<vmem>>, vector<16x96xf32>
    %c0_2 = arith.constant 0 : index
    %c0_3 = arith.constant 0 : index
    %4 = vector.load %arg3[%c0_2, %c0_3] : memref<16x32xbf16, #tpu.memory_space<vmem>>, vector<16x32xbf16>
    %c0_4 = arith.constant 0 : index
    %c0_5 = arith.constant 0 : index
    %5 = vector.load %arg4[%c0_4, %c0_5] : memref<32x96xbf16, #tpu.memory_space<vmem>>, vector<32x96xbf16>
    %cst = arith.constant dense<0.000000e+00> : vector<16x96xf32>
    %6 = tpu.matmul %4, %5, %cst {dimension_numbers = #tpu.dot_dimension_numbers<[1], [0], [0], [1], [0, 0, 1, 1], [], []>} : vector<16x32xbf16>, vector<32x96xbf16>, vector<16x96xf32> -> vector<16x96xf32>
    %7 = arith.addf %3, %6 : vector<16x96xf32>
    %c0_6 = arith.constant 0 : index
    %c0_7 = arith.constant 0 : index
    %8 = vector.load %arg7[%c0_6, %c0_7] : memref<16x96xf32, #tpu.memory_space<vmem>>, vector<16x96xf32>
    tpu.vector_store %arg7[%c0_6, %c0_7], %7 {strides = array<i32>} : memref<16x96xf32, #tpu.memory_space<vmem>>, vector<16x96xf32>,
    %c0_i32_8 = arith.constant 0 : i32
    %9 = arith.cmpi eq, %arg2, %c0_i32_8 : i32
    %10 = arith.extui %9 : i1 to i32
    %c0_i32_9 = arith.constant 0 : i32
    %11 = arith.cmpi ne, %10, %c0_i32_9 : i32
    scf.if %11 {
      %c0_10 = arith.constant 0 : index
      %c0_11 = arith.constant 0 : index
      %12 = vector.load %arg7[%c0_10, %c0_11] : memref<16x96xf32, #tpu.memory_space<vmem>>, vector<16x96xf32>
      %c0_12 = arith.constant 0 : index
      %c0_13 = arith.constant 0 : index
      %13 = vector.load %arg5[%c0_12, %c0_13] : memref<1x96xf32, #tpu.memory_space<vmem>>, vector<1x96xf32>
      %14 = vector.broadcast %13 : vector<1x96xf32> to vector<16x96xf32>
      %15 = arith.addf %12, %14 : vector<16x96xf32>
      %16 = arith.truncf %15 : vector<16x96xf32> to vector<16x96xbf16>
      %c0_14 = arith.constant 0 : index
      %c0_15 = arith.constant 0 : index
      %17 = vector.load %arg6[%c0_14, %c0_15] : memref<16x96xbf16, #tpu.memory_space<vmem>>, vector<16x96xbf16>
      tpu.vector_store %arg6[%c0_14, %c0_15], %16 {strides = array<i32>} : memref<16x96xbf16, #tpu.memory_space<vmem>>, vector<16x96xbf16>,
    } else {
    }
    return
  }
  func.func @transform_0(%arg0: i32, %arg1: i32, %arg2: i32) -> (i32, i32) {
    %c0_i32 = arith.constant 0 : i32
    return %arg0, %arg2 : i32, i32
  }
  func.func @transform_1(%arg0: i32, %arg1: i32, %arg2: i32) -> (i32, i32) {
    %c0_i32 = arith.constant 0 : i32
    return %arg2, %arg1 : i32, i32
  }
  func.func @transform_2(%arg0: i32, %arg1: i32, %arg2: i32) -> (i32, i32) {
    %c0_i32 = arith.constant 0 : i32
    %c0_i32_0 = arith.constant 0 : i32
    return %c0_i32, %arg1 : i32, i32
  }
  func.func @transform_3(%arg0: i32, %arg1: i32, %arg2: i32) -> (i32, i32) {
    %c0_i32 = arith.constant 0 : i32
    return %arg0, %arg1 : i32, i32
  }
}

module attributes {stable_mosaic.version = 11 : i64} {
  func.func @_layernorm_kernel(%arg0: i32, %arg1: memref<16x32xf32, #tpu.memory_space<vmem>>, %arg2: memref<1x32xf32, #tpu.memory_space<vmem>>, %arg3: memref<1x32xf32, #tpu.memory_space<vmem>>, %arg4: memref<16x32xbf16, #tpu.memory_space<vmem>>) attributes {dimension_semantics = [#tpu.dimension_semantics<parallel>], iteration_bounds = array<i64: 1>, scalar_prefetch = 0 : i64, scratch_operands = 0 : i64, tpu.core_type = #tpu.core_type<tc>, window_params = [{transform_indices = @transform_0, window_bounds = array<i64: 16, 32>}, {pipeline_mode = #tpu.pipeline_mode<synchronous>, transform_indices = @transform_1, window_bounds = array<i64: 1, 32>}, {pipeline_mode = #tpu.pipeline_mode<synchronous>, transform_indices = @transform_2, window_bounds = array<i64: 1, 32>}, {transform_indices = @transform_3, window_bounds = array<i64: 16, 32>}]} {
    %c0 = arith.constant 0 : index
    %c0_0 = arith.constant 0 : index
    %0 = vector.load %arg1[%c0, %c0_0] : memref<16x32xf32, #tpu.memory_space<vmem>>, vector<16x32xf32>
    %cst = arith.constant dense<0.000000e+00> : vector<16xf32>
    %1 = vector.multi_reduction <add>, %0, %cst [1] : vector<16x32xf32> to vector<16xf32>
    %2 = vector.shape_cast %1 : vector<16xf32> to vector<16x1xf32>
    %cst_1 = arith.constant 3.200000e+01 : f32
    %3 = vector.broadcast %cst_1 : f32 to vector<16x1xf32>
    %4 = arith.divf %2, %3 : vector<16x1xf32>
    %5 = vector.broadcast %4 : vector<16x1xf32> to vector<16x32xf32>
    %6 = arith.subf %0, %5 : vector<16x32xf32>
    %7 = arith.mulf %6, %6 : vector<16x32xf32>
    %cst_2 = arith.constant dense<0.000000e+00> : vector<16xf32>
    %8 = vector.multi_reduction <add>, %7, %cst_2 [1] : vector<16x32xf32> to vector<16xf32>
    %9 = vector.shape_cast %8 : vector<16xf32> to vector<16x1xf32>
    %cst_3 = arith.constant 3.200000e+01 : f32
    %10 = vector.broadcast %cst_3 : f32 to vector<16x1xf32>
    %11 = arith.divf %9, %10 : vector<16x1xf32>
    %cst_4 = arith.constant 9.99999996E-13 : f32
    %12 = vector.broadcast %cst_4 : f32 to vector<16x1xf32>
    %13 = arith.addf %11, %12 : vector<16x1xf32>
    %14 = math.rsqrt %13 : vector<16x1xf32>
    %15 = vector.broadcast %4 : vector<16x1xf32> to vector<16x32xf32>
    %16 = arith.subf %0, %15 : vector<16x32xf32>
    %17 = vector.broadcast %14 : vector<16x1xf32> to vector<16x32xf32>
    %18 = arith.mulf %16, %17 : vector<16x32xf32>
    %c0_5 = arith.constant 0 : index
    %c0_6 = arith.constant 0 : index
    %19 = vector.load %arg2[%c0_5, %c0_6] : memref<1x32xf32, #tpu.memory_space<vmem>>, vector<1x32xf32>
    %20 = vector.broadcast %19 : vector<1x32xf32> to vector<16x32xf32>
    %21 = arith.mulf %18, %20 : vector<16x32xf32>
    %c0_7 = arith.constant 0 : index
    %c0_8 = arith.constant 0 : index
    %22 = vector.load %arg3[%c0_7, %c0_8] : memref<1x32xf32, #tpu.memory_space<vmem>>, vector<1x32xf32>
    %23 = vector.broadcast %22 : vector<1x32xf32> to vector<16x32xf32>
    %24 = arith.addf %21, %23 : vector<16x32xf32>
    %25 = arith.truncf %24 : vector<16x32xf32> to vector<16x32xbf16>
    %c0_9 = arith.constant 0 : index
    %c0_10 = arith.constant 0 : index
    %26 = vector.load %arg4[%c0_9, %c0_10] : memref<16x32xbf16, #tpu.memory_space<vmem>>, vector<16x32xbf16>
    tpu.vector_store %arg4[%c0_9, %c0_10], %25 {strides = array<i32>} : memref<16x32xbf16, #tpu.memory_space<vmem>>, vector<16x32xbf16>,
    return
  }
  func.func @transform_0(%arg0: i32) -> (i32, i32) {
    %c0_i32 = arith.constant 0 : i32
    %c0_i32_0 = arith.constant 0 : i32
    return %arg0, %c0_i32 : i32, i32
  }
  func.func @transform_1(%arg0: i32) -> (i32, i32) {
    %c0_i32 = arith.constant 0 : i32
    %c0_i32_0 = arith.constant 0 : i32
    %c0_i32_1 = arith.constant 0 : i32
    return %c0_i32, %c0_i32_0 : i32, i32
  }
  func.func @transform_2(%arg0: i32) -> (i32, i32) {
    %c0_i32 = arith.constant 0 : i32
    %c0_i32_0 = arith.constant 0 : i32
    %c0_i32_1 = arith.constant 0 : i32
    return %c0_i32, %c0_i32_0 : i32, i32
  }
  func.func @transform_3(%arg0: i32) -> (i32, i32) {
    %c0_i32 = arith.constant 0 : i32
    %c0_i32_0 = arith.constant 0 : i32
    return %arg0, %c0_i32 : i32, i32
  }
}

module attributes {stable_mosaic.version = 11 : i64} {
  func.func @_attention_kernel(%arg0: i32, %arg1: memref<1x8x96xbf16, #tpu.memory_space<vmem>>, %arg2: memref<1x1x8xf32, #tpu.memory_space<vmem>>, %arg3: memref<1x8x32xbf16, #tpu.memory_space<vmem>>) attributes {dimension_semantics = [#tpu.dimension_semantics<parallel>], iteration_bounds = array<i64: 2>, scalar_prefetch = 0 : i64, scratch_operands = 0 : i64, tpu.core_type = #tpu.core_type<tc>, window_params = [{transform_indices = @transform_0, window_bounds = array<i64: 1, 8, 96>}, {transform_indices = @transform_1, window_bounds = array<i64: 1, 1, 8>}, {transform_indices = @transform_2, window_bounds = array<i64: 1, 8, 32>}]} {
    %c0 = arith.constant 0 : index
    %c0_0 = arith.constant 0 : index
    %c0_1 = arith.constant 0 : index
    %0 = vector.load %arg1[%c0, %c0_0, %c0_1] : memref<1x8x96xbf16, #tpu.memory_space<vmem>>, vector<1x8x96xbf16>
    %1 = vector.shape_cast %0 : vector<1x8x96xbf16> to vector<8x96xbf16>
    %c0_2 = arith.constant 0 : index
    %c0_3 = arith.constant 0 : index
    %c0_4 = arith.constant 0 : index
    %2 = vector.load %arg2[%c0_2, %c0_3, %c0_4] : memref<1x1x8xf32, #tpu.memory_space<vmem>>, vector<1x1x8xf32>
    %3 = vector.shape_cast %2 : vector<1x1x8xf32> to vector<1x8xf32>
    %4 = vector.extract_strided_slice %1 {offsets = [0, 0], sizes = [8, 8], strides = [1, 1]} : vector<8x96xbf16> to vector<8x8xbf16>
    %5 = arith.extf %4 : vector<8x8xbf16> to vector<8x8xf32>
    %cst = arith.constant 0.353553385 : f32
    %6 = vector.broadcast %cst : f32 to vector<8x8xf32>
    %7 = arith.mulf %5, %6 : vector<8x8xf32>
    %8 = arith.truncf %7 : vector<8x8xf32> to vector<8x8xbf16>
    %9 = vector.extract_strided_slice %1 {offsets = [0, 32], sizes = [8, 8], strides = [1, 1]} : vector<8x96xbf16> to vector<8x8xbf16>
    %10 = vector.extract_strided_slice %1 {offsets = [0, 64], sizes = [8, 8], strides = [1, 1]} : vector<8x96xbf16> to vector<8x8xbf16>
    %cst_5 = arith.constant dense<0.000000e+00> : vector<8x8xf32>
    %11 = tpu.matmul %8, %9, %cst_5 {dimension_numbers = #tpu.dot_dimension_numbers<[1], [1], [0], [0], [0, 0, 1, 0], [], []>} : vector<8x8xbf16>, vector<8x8xbf16>, vector<8x8xf32> -> vector<8x8xf32>
    %12 = vector.broadcast %3 : vector<1x8xf32> to vector<8x8xf32>
    %13 = arith.addf %11, %12 : vector<8x8xf32>
    %cst_6 = arith.constant dense<0xFF800000> : vector<8xf32>
    %14 = vector.multi_reduction <maximumf>, %13, %cst_6 [1] : vector<8x8xf32> to vector<8xf32>
    %15 = vector.shape_cast %14 : vector<8xf32> to vector<8x1xf32>
    %16 = vector.broadcast %15 : vector<8x1xf32> to vector<8x8xf32>
    %17 = arith.subf %13, %16 : vector<8x8xf32>
    %18 = math.exp %17 : vector<8x8xf32>
    %cst_7 = arith.constant dense<0.000000e+00> : vector<8xf32>
    %19 = vector.multi_reduction <add>, %18, %cst_7 [1] : vector<8x8xf32> to vector<8xf32>
    %20 = vector.shape_cast %19 : vector<8xf32> to vector<8x1xf32>
    %21 = tpu.reciprocal %20 {approx = true} : vector<8x1xf32> -> vector<8x1xf32>
    %22 = vector.broadcast %21 : vector<8x1xf32> to vector<8x8xf32>
    %23 = arith.mulf %18, %22 : vector<8x8xf32>
    %24 = arith.truncf %23 : vector<8x8xf32> to vector<8x8xbf16>
    %cst_8 = arith.constant dense<0.000000e+00> : vector<8x8xf32>
    %25 = tpu.matmul %24, %10, %cst_8 {dimension_numbers = #tpu.dot_dimension_numbers<[1], [0], [0], [1], [0, 0, 1, 1], [], []>} : vector<8x8xbf16>, vector<8x8xbf16>, vector<8x8xf32> -> vector<8x8xf32>
    %26 = vector.extract_strided_slice %1 {offsets = [0, 8], sizes = [8, 8], strides = [1, 1]} : vector<8x96xbf16> to vector<8x8xbf16>
    %27 = arith.extf %26 : vector<8x8xbf16> to vector<8x8xf32>
    %cst_9 = arith.constant 0.353553385 : f32
    %28 = vector.broadcast %cst_9 : f32 to vector<8x8xf32>
    %29 = arith.mulf %27, %28 : vector<8x8xf32>
    %30 = arith.truncf %29 : vector<8x8xf32> to vector<8x8xbf16>
    %31 = vector.extract_strided_slice %1 {offsets = [0, 40], sizes = [8, 8], strides = [1, 1]} : vector<8x96xbf16> to vector<8x8xbf16>
    %32 = vector.extract_strided_slice %1 {offsets = [0, 72], sizes = [8, 8], strides = [1, 1]} : vector<8x96xbf16> to vector<8x8xbf16>
    %cst_10 = arith.constant dense<0.000000e+00> : vector<8x8xf32>
    %33 = tpu.matmul %30, %31, %cst_10 {dimension_numbers = #tpu.dot_dimension_numbers<[1], [1], [0], [0], [0, 0, 1, 0], [], []>} : vector<8x8xbf16>, vector<8x8xbf16>, vector<8x8xf32> -> vector<8x8xf32>
    %34 = vector.broadcast %3 : vector<1x8xf32> to vector<8x8xf32>
    %35 = arith.addf %33, %34 : vector<8x8xf32>
    %cst_11 = arith.constant dense<0xFF800000> : vector<8xf32>
    %36 = vector.multi_reduction <maximumf>, %35, %cst_11 [1] : vector<8x8xf32> to vector<8xf32>
    %37 = vector.shape_cast %36 : vector<8xf32> to vector<8x1xf32>
    %38 = vector.broadcast %37 : vector<8x1xf32> to vector<8x8xf32>
    %39 = arith.subf %35, %38 : vector<8x8xf32>
    %40 = math.exp %39 : vector<8x8xf32>
    %cst_12 = arith.constant dense<0.000000e+00> : vector<8xf32>
    %41 = vector.multi_reduction <add>, %40, %cst_12 [1] : vector<8x8xf32> to vector<8xf32>
    %42 = vector.shape_cast %41 : vector<8xf32> to vector<8x1xf32>
    %43 = tpu.reciprocal %42 {approx = true} : vector<8x1xf32> -> vector<8x1xf32>
    %44 = vector.broadcast %43 : vector<8x1xf32> to vector<8x8xf32>
    %45 = arith.mulf %40, %44 : vector<8x8xf32>
    %46 = arith.truncf %45 : vector<8x8xf32> to vector<8x8xbf16>
    %cst_13 = arith.constant dense<0.000000e+00> : vector<8x8xf32>
    %47 = tpu.matmul %46, %32, %cst_13 {dimension_numbers = #tpu.dot_dimension_numbers<[1], [0], [0], [1], [0, 0, 1, 1], [], []>} : vector<8x8xbf16>, vector<8x8xbf16>, vector<8x8xf32> -> vector<8x8xf32>
    %48 = vector.extract_strided_slice %1 {offsets = [0, 16], sizes = [8, 8], strides = [1, 1]} : vector<8x96xbf16> to vector<8x8xbf16>
    %49 = arith.extf %48 : vector<8x8xbf16> to vector<8x8xf32>
    %cst_14 = arith.constant 0.353553385 : f32
    %50 = vector.broadcast %cst_14 : f32 to vector<8x8xf32>
    %51 = arith.mulf %49, %50 : vector<8x8xf32>
    %52 = arith.truncf %51 : vector<8x8xf32> to vector<8x8xbf16>
    %53 = vector.extract_strided_slice %1 {offsets = [0, 48], sizes = [8, 8], strides = [1, 1]} : vector<8x96xbf16> to vector<8x8xbf16>
    %54 = vector.extract_strided_slice %1 {offsets = [0, 80], sizes = [8, 8], strides = [1, 1]} : vector<8x96xbf16> to vector<8x8xbf16>
    %cst_15 = arith.constant dense<0.000000e+00> : vector<8x8xf32>
    %55 = tpu.matmul %52, %53, %cst_15 {dimension_numbers = #tpu.dot_dimension_numbers<[1], [1], [0], [0], [0, 0, 1, 0], [], []>} : vector<8x8xbf16>, vector<8x8xbf16>, vector<8x8xf32> -> vector<8x8xf32>
    %56 = vector.broadcast %3 : vector<1x8xf32> to vector<8x8xf32>
    %57 = arith.addf %55, %56 : vector<8x8xf32>
    %cst_16 = arith.constant dense<0xFF800000> : vector<8xf32>
    %58 = vector.multi_reduction <maximumf>, %57, %cst_16 [1] : vector<8x8xf32> to vector<8xf32>
    %59 = vector.shape_cast %58 : vector<8xf32> to vector<8x1xf32>
    %60 = vector.broadcast %59 : vector<8x1xf32> to vector<8x8xf32>
    %61 = arith.subf %57, %60 : vector<8x8xf32>
    %62 = math.exp %61 : vector<8x8xf32>
    %cst_17 = arith.constant dense<0.000000e+00> : vector<8xf32>
    %63 = vector.multi_reduction <add>, %62, %cst_17 [1] : vector<8x8xf32> to vector<8xf32>
    %64 = vector.shape_cast %63 : vector<8xf32> to vector<8x1xf32>
    %65 = tpu.reciprocal %64 {approx = true} : vector<8x1xf32> -> vector<8x1xf32>
    %66 = vector.broadcast %65 : vector<8x1xf32> to vector<8x8xf32>
    %67 = arith.mulf %62, %66 : vector<8x8xf32>
    %68 = arith.truncf %67 : vector<8x8xf32> to vector<8x8xbf16>
    %cst_18 = arith.constant dense<0.000000e+00> : vector<8x8xf32>
    %69 = tpu.matmul %68, %54, %cst_18 {dimension_numbers = #tpu.dot_dimension_numbers<[1], [0], [0], [1], [0, 0, 1, 1], [], []>} : vector<8x8xbf16>, vector<8x8xbf16>, vector<8x8xf32> -> vector<8x8xf32>
    %70 = vector.extract_strided_slice %1 {offsets = [0, 24], sizes = [8, 8], strides = [1, 1]} : vector<8x96xbf16> to vector<8x8xbf16>
    %71 = arith.extf %70 : vector<8x8xbf16> to vector<8x8xf32>
    %cst_19 = arith.constant 0.353553385 : f32
    %72 = vector.broadcast %cst_19 : f32 to vector<8x8xf32>
    %73 = arith.mulf %71, %72 : vector<8x8xf32>
    %74 = arith.truncf %73 : vector<8x8xf32> to vector<8x8xbf16>
    %75 = vector.extract_strided_slice %1 {offsets = [0, 56], sizes = [8, 8], strides = [1, 1]} : vector<8x96xbf16> to vector<8x8xbf16>
    %76 = vector.extract_strided_slice %1 {offsets = [0, 88], sizes = [8, 8], strides = [1, 1]} : vector<8x96xbf16> to vector<8x8xbf16>
    %cst_20 = arith.constant dense<0.000000e+00> : vector<8x8xf32>
    %77 = tpu.matmul %74, %75, %cst_20 {dimension_numbers = #tpu.dot_dimension_numbers<[1], [1], [0], [0], [0, 0, 1, 0], [], []>} : vector<8x8xbf16>, vector<8x8xbf16>, vector<8x8xf32> -> vector<8x8xf32>
    %78 = vector.broadcast %3 : vector<1x8xf32> to vector<8x8xf32>
    %79 = arith.addf %77, %78 : vector<8x8xf32>
    %cst_21 = arith.constant dense<0xFF800000> : vector<8xf32>
    %80 = vector.multi_reduction <maximumf>, %79, %cst_21 [1] : vector<8x8xf32> to vector<8xf32>
    %81 = vector.shape_cast %80 : vector<8xf32> to vector<8x1xf32>
    %82 = vector.broadcast %81 : vector<8x1xf32> to vector<8x8xf32>
    %83 = arith.subf %79, %82 : vector<8x8xf32>
    %84 = math.exp %83 : vector<8x8xf32>
    %cst_22 = arith.constant dense<0.000000e+00> : vector<8xf32>
    %85 = vector.multi_reduction <add>, %84, %cst_22 [1] : vector<8x8xf32> to vector<8xf32>
    %86 = vector.shape_cast %85 : vector<8xf32> to vector<8x1xf32>
    %87 = tpu.reciprocal %86 {approx = true} : vector<8x1xf32> -> vector<8x1xf32>
    %88 = vector.broadcast %87 : vector<8x1xf32> to vector<8x8xf32>
    %89 = arith.mulf %84, %88 : vector<8x8xf32>
    %90 = arith.truncf %89 : vector<8x8xf32> to vector<8x8xbf16>
    %cst_23 = arith.constant dense<0.000000e+00> : vector<8x8xf32>
    %91 = tpu.matmul %90, %76, %cst_23 {dimension_numbers = #tpu.dot_dimension_numbers<[1], [0], [0], [1], [0, 0, 1, 1], [], []>} : vector<8x8xbf16>, vector<8x8xbf16>, vector<8x8xf32> -> vector<8x8xf32>
    %92 = tpu.concatenate %25, %47, %69, %91 in 1 : vector<8x8xf32>, vector<8x8xf32>, vector<8x8xf32>, vector<8x8xf32> -> vector<8x32xf32>
    %93 = arith.truncf %92 : vector<8x32xf32> to vector<8x32xbf16>
    %c0_24 = arith.constant 0 : index
    %c0_25 = arith.constant 0 : index
    %c0_26 = arith.constant 0 : index
    %94 = vector.load %arg3[%c0_24, %c0_25, %c0_26] : memref<1x8x32xbf16, #tpu.memory_space<vmem>>, vector<1x8x32xbf16>
    %95 = vector.shape_cast %94 : vector<1x8x32xbf16> to vector<8x32xbf16>
    %96 = vector.shape_cast %93 : vector<8x32xbf16> to vector<1x8x32xbf16>
    tpu.vector_store %arg3[%c0_24, %c0_25, %c0_26], %96 {strides = array<i32>} : memref<1x8x32xbf16, #tpu.memory_space<vmem>>, vector<1x8x32xbf16>,
    return
  }
  func.func @transform_0(%arg0: i32) -> (i32, i32, i32) {
    %c0_i32 = arith.constant 0 : i32
    %c0_i32_0 = arith.constant 0 : i32
    %c0_i32_1 = arith.constant 0 : i32
    return %arg0, %c0_i32, %c0_i32_0 : i32, i32, i32
  }
  func.func @transform_1(%arg0: i32) -> (i32, i32, i32) {
    %c0_i32 = arith.constant 0 : i32
    %c0_i32_0 = arith.constant 0 : i32
    %c0_i32_1 = arith.constant 0 : i32
    return %arg0, %c0_i32, %c0_i32_0 : i32, i32, i32
  }
  func.func @transform_2(%arg0: i32) -> (i32, i32, i32) {
    %c0_i32 = arith.constant 0 : i32
    %c0_i32_0 = arith.constant 0 : i32
    %c0_i32_1 = arith.constant 0 : i32
    return %arg0, %c0_i32, %c0_i32_0 : i32, i32, i32
  }
}

module attributes {stable_mosaic.version = 11 : i64} {
  func.func @_linear_ln_kernel(%arg0: i32, %arg1: i32, %arg2: memref<16x32xbf16, #tpu.memory_space<vmem>>, %arg3: memref<32x32xbf16, #tpu.memory_space<vmem>>, %arg4: memref<1x32xf32, #tpu.memory_space<vmem>>, %arg5: memref<16x32xbf16, #tpu.memory_space<vmem>>, %arg6: memref<1x32xf32, #tpu.memory_space<vmem>>, %arg7: memref<1x32xf32, #tpu.memory_space<vmem>>, %arg8: memref<16x32xbf16, #tpu.memory_space<vmem>>, %arg9: memref<16x32xf32, #tpu.memory_space<vmem>>) attributes {dimension_semantics = [#tpu.dimension_semantics<parallel>, #tpu.dimension_semantics<arbitrary>], iteration_bounds = array<i64: 1, 1>, scalar_prefetch = 0 : i64, scratch_operands = 1 : i64, tpu.core_type = #tpu.core_type<tc>, window_params = [{transform_indices = @transform_0, window_bounds = array<i64: 16, 32>}, {transform_indices = @transform_1, window_bounds = array<i64: 32, 32>}, {pipeline_mode = #tpu.pipeline_mode<synchronous>, transform_indices = @transform_2, window_bounds = array<i64: 1, 32>}, {transform_indices = @transform_3, window_bounds = array<i64: 16, 32>}, {pipeline_mode = #tpu.pipeline_mode<synchronous>, transform_indices = @transform_4, window_bounds = array<i64: 1, 32>}, {pipeline_mode = #tpu.pipeline_mode<synchronous>, transform_indices = @transform_5, window_bounds = array<i64: 1, 32>}, {transform_indices = @transform_6, window_bounds = array<i64: 16, 32>}]} {
    %c0_i32 = arith.constant 0 : i32
    %0 = arith.cmpi eq, %arg1, %c0_i32 : i32
    %1 = arith.extui %0 : i1 to i32
    %c0_i32_0 = arith.constant 0 : i32
    %2 = arith.cmpi ne, %1, %c0_i32_0 : i32
    scf.if %2 {
      %cst_10 = arith.constant 0.000000e+00 : f32
      %12 = vector.broadcast %cst_10 : f32 to vector<16x32xf32>
      %c0_11 = arith.constant 0 : index
      %c0_12 = arith.constant 0 : index
      %13 = vector.load %arg9[%c0_11, %c0_12] : memref<16x32xf32, #tpu.memory_space<vmem>>, vector<16x32xf32>
      tpu.vector_store %arg9[%c0_11, %c0_12], %12 {strides = array<i32>} : memref<16x32xf32, #tpu.memory_space<vmem>>, vector<16x32xf32>,
    } else {
    }
    %c0 = arith.constant 0 : index
    %c0_1 = arith.constant 0 : index
    %3 = vector.load %arg9[%c0, %c0_1] : memref<16x32xf32, #tpu.memory_space<vmem>>, vector<16x32xf32>
    %c0_2 = arith.constant 0 : index
    %c0_3 = arith.constant 0 : index
    %4 = vector.load %arg2[%c0_2, %c0_3] : memref<16x32xbf16, #tpu.memory_space<vmem>>, vector<16x32xbf16>
    %c0_4 = arith.constant 0 : index
    %c0_5 = arith.constant 0 : index
    %5 = vector.load %arg3[%c0_4, %c0_5] : memref<32x32xbf16, #tpu.memory_space<vmem>>, vector<32x32xbf16>
    %cst = arith.constant dense<0.000000e+00> : vector<16x32xf32>
    %6 = tpu.matmul %4, %5, %cst {dimension_numbers = #tpu.dot_dimension_numbers<[1], [0], [0], [1], [0, 0, 1, 1], [], []>} : vector<16x32xbf16>, vector<32x32xbf16>, vector<16x32xf32> -> vector<16x32xf32>
    %7 = arith.addf %3, %6 : vector<16x32xf32>
    %c0_6 = arith.constant 0 : index
    %c0_7 = arith.constant 0 : index
    %8 = vector.load %arg9[%c0_6, %c0_7] : memref<16x32xf32, #tpu.memory_space<vmem>>, vector<16x32xf32>
    tpu.vector_store %arg9[%c0_6, %c0_7], %7 {strides = array<i32>} : memref<16x32xf32, #tpu.memory_space<vmem>>, vector<16x32xf32>,
    %c0_i32_8 = arith.constant 0 : i32
    %9 = arith.cmpi eq, %arg1, %c0_i32_8 : i32
    %10 = arith.extui %9 : i1 to i32
    %c0_i32_9 = arith.constant 0 : i32
    %11 = arith.cmpi ne, %10, %c0_i32_9 : i32
    scf.if %11 {
      %c0_10 = arith.constant 0 : index
      %c0_11 = arith.constant 0 : index
      %12 = vector.load %arg9[%c0_10, %c0_11] : memref<16x32xf32, #tpu.memory_space<vmem>>, vector<16x32xf32>
      %c0_12 = arith.constant 0 : index
      %c0_13 = arith.constant 0 : index
      %13 = vector.load %arg4[%c0_12, %c0_13] : memref<1x32xf32, #tpu.memory_space<vmem>>, vector<1x32xf32>
      %14 = vector.broadcast %13 : vector<1x32xf32> to vector<16x32xf32>
      %15 = arith.addf %12, %14 : vector<16x32xf32>
      %c0_14 = arith.constant 0 : index
      %c0_15 = arith.constant 0 : index
      %16 = vector.load %arg5[%c0_14, %c0_15] : memref<16x32xbf16, #tpu.memory_space<vmem>>, vector<16x32xbf16>
      %17 = arith.extf %16 : vector<16x32xbf16> to vector<16x32xf32>
      %18 = arith.addf %15, %17 : vector<16x32xf32>
      %cst_16 = arith.constant dense<0.000000e+00> : vector<16xf32>
      %19 = vector.multi_reduction <add>, %18, %cst_16 [1] : vector<16x32xf32> to vector<16xf32>
      %20 = vector.shape_cast %19 : vector<16xf32> to vector<16x1xf32>
      %cst_17 = arith.constant 3.200000e+01 : f32
      %21 = vector.broadcast %cst_17 : f32 to vector<16x1xf32>
      %22 = arith.divf %20, %21 : vector<16x1xf32>
      %23 = vector.broadcast %22 : vector<16x1xf32> to vector<16x32xf32>
      %24 = arith.subf %18, %23 : vector<16x32xf32>
      %25 = arith.mulf %24, %24 : vector<16x32xf32>
      %cst_18 = arith.constant dense<0.000000e+00> : vector<16xf32>
      %26 = vector.multi_reduction <add>, %25, %cst_18 [1] : vector<16x32xf32> to vector<16xf32>
      %27 = vector.shape_cast %26 : vector<16xf32> to vector<16x1xf32>
      %cst_19 = arith.constant 3.200000e+01 : f32
      %28 = vector.broadcast %cst_19 : f32 to vector<16x1xf32>
      %29 = arith.divf %27, %28 : vector<16x1xf32>
      %cst_20 = arith.constant 9.99999996E-13 : f32
      %30 = vector.broadcast %cst_20 : f32 to vector<16x1xf32>
      %31 = arith.addf %29, %30 : vector<16x1xf32>
      %32 = math.rsqrt %31 : vector<16x1xf32>
      %33 = vector.broadcast %22 : vector<16x1xf32> to vector<16x32xf32>
      %34 = arith.subf %18, %33 : vector<16x32xf32>
      %35 = vector.broadcast %32 : vector<16x1xf32> to vector<16x32xf32>
      %36 = arith.mulf %34, %35 : vector<16x32xf32>
      %c0_21 = arith.constant 0 : index
      %c0_22 = arith.constant 0 : index
      %37 = vector.load %arg6[%c0_21, %c0_22] : memref<1x32xf32, #tpu.memory_space<vmem>>, vector<1x32xf32>
      %38 = vector.broadcast %37 : vector<1x32xf32> to vector<16x32xf32>
      %39 = arith.mulf %36, %38 : vector<16x32xf32>
      %c0_23 = arith.constant 0 : index
      %c0_24 = arith.constant 0 : index
      %40 = vector.load %arg7[%c0_23, %c0_24] : memref<1x32xf32, #tpu.memory_space<vmem>>, vector<1x32xf32>
      %41 = vector.broadcast %40 : vector<1x32xf32> to vector<16x32xf32>
      %42 = arith.addf %39, %41 : vector<16x32xf32>
      %43 = arith.truncf %42 : vector<16x32xf32> to vector<16x32xbf16>
      %c0_25 = arith.constant 0 : index
      %c0_26 = arith.constant 0 : index
      %44 = vector.load %arg8[%c0_25, %c0_26] : memref<16x32xbf16, #tpu.memory_space<vmem>>, vector<16x32xbf16>
      tpu.vector_store %arg8[%c0_25, %c0_26], %43 {strides = array<i32>} : memref<16x32xbf16, #tpu.memory_space<vmem>>, vector<16x32xbf16>,
    } else {
    }
    return
  }
  func.func @transform_0(%arg0: i32, %arg1: i32) -> (i32, i32) {
    %c0_i32 = arith.constant 0 : i32
    return %arg0, %arg1 : i32, i32
  }
  func.func @transform_1(%arg0: i32, %arg1: i32) -> (i32, i32) {
    %c0_i32 = arith.constant 0 : i32
    %c0_i32_0 = arith.constant 0 : i32
    return %arg1, %c0_i32 : i32, i32
  }
  func.func @transform_2(%arg0: i32, %arg1: i32) -> (i32, i32) {
    %c0_i32 = arith.constant 0 : i32
    %c0_i32_0 = arith.constant 0 : i32
    %c0_i32_1 = arith.constant 0 : i32
    return %c0_i32, %c0_i32_0 : i32, i32
  }
  func.func @transform_3(%arg0: i32, %arg1: i32) -> (i32, i32) {
    %c0_i32 = arith.constant 0 : i32
    %c0_i32_0 = arith.constant 0 : i32
    return %arg0, %c0_i32 : i32, i32
  }
  func.func @transform_4(%arg0: i32, %arg1: i32) -> (i32, i32) {
    %c0_i32 = arith.constant 0 : i32
    %c0_i32_0 = arith.constant 0 : i32
    %c0_i32_1 = arith.constant 0 : i32
    return %c0_i32, %c0_i32_0 : i32, i32
  }
  func.func @transform_5(%arg0: i32, %arg1: i32) -> (i32, i32) {
    %c0_i32 = arith.constant 0 : i32
    %c0_i32_0 = arith.constant 0 : i32
    %c0_i32_1 = arith.constant 0 : i32
    return %c0_i32, %c0_i32_0 : i32, i32
  }
  func.func @transform_6(%arg0: i32, %arg1: i32) -> (i32, i32) {
    %c0_i32 = arith.constant 0 : i32
    %c0_i32_0 = arith.constant 0 : i32
    return %arg0, %c0_i32 : i32, i32
  }
}

module attributes {stable_mosaic.version = 11 : i64} {
  func.func @_linear_kernel(%arg0: i32, %arg1: i32, %arg2: i32, %arg3: memref<16x32xbf16, #tpu.memory_space<vmem>>, %arg4: memref<32x64xbf16, #tpu.memory_space<vmem>>, %arg5: memref<1x64xf32, #tpu.memory_space<vmem>>, %arg6: memref<16x64xbf16, #tpu.memory_space<vmem>>, %arg7: memref<16x64xf32, #tpu.memory_space<vmem>>) attributes {dimension_semantics = [#tpu.dimension_semantics<parallel>, #tpu.dimension_semantics<parallel>, #tpu.dimension_semantics<arbitrary>], iteration_bounds = array<i64: 1, 1, 1>, scalar_prefetch = 0 : i64, scratch_operands = 1 : i64, tpu.core_type = #tpu.core_type<tc>, window_params = [{transform_indices = @transform_0, window_bounds = array<i64: 16, 32>}, {transform_indices = @transform_1, window_bounds = array<i64: 32, 64>}, {transform_indices = @transform_2, window_bounds = array<i64: 1, 64>}, {transform_indices = @transform_3, window_bounds = array<i64: 16, 64>}]} {
    %c0_i32 = arith.constant 0 : i32
    %0 = arith.cmpi eq, %arg2, %c0_i32 : i32
    %1 = arith.extui %0 : i1 to i32
    %c0_i32_0 = arith.constant 0 : i32
    %2 = arith.cmpi ne, %1, %c0_i32_0 : i32
    scf.if %2 {
      %cst_10 = arith.constant 0.000000e+00 : f32
      %12 = vector.broadcast %cst_10 : f32 to vector<16x64xf32>
      %c0_11 = arith.constant 0 : index
      %c0_12 = arith.constant 0 : index
      %13 = vector.load %arg7[%c0_11, %c0_12] : memref<16x64xf32, #tpu.memory_space<vmem>>, vector<16x64xf32>
      tpu.vector_store %arg7[%c0_11, %c0_12], %12 {strides = array<i32>} : memref<16x64xf32, #tpu.memory_space<vmem>>, vector<16x64xf32>,
    } else {
    }
    %c0 = arith.constant 0 : index
    %c0_1 = arith.constant 0 : index
    %3 = vector.load %arg7[%c0, %c0_1] : memref<16x64xf32, #tpu.memory_space<vmem>>, vector<16x64xf32>
    %c0_2 = arith.constant 0 : index
    %c0_3 = arith.constant 0 : index
    %4 = vector.load %arg3[%c0_2, %c0_3] : memref<16x32xbf16, #tpu.memory_space<vmem>>, vector<16x32xbf16>
    %c0_4 = arith.constant 0 : index
    %c0_5 = arith.constant 0 : index
    %5 = vector.load %arg4[%c0_4, %c0_5] : memref<32x64xbf16, #tpu.memory_space<vmem>>, vector<32x64xbf16>
    %cst = arith.constant dense<0.000000e+00> : vector<16x64xf32>
    %6 = tpu.matmul %4, %5, %cst {dimension_numbers = #tpu.dot_dimension_numbers<[1], [0], [0], [1], [0, 0, 1, 1], [], []>} : vector<16x32xbf16>, vector<32x64xbf16>, vector<16x64xf32> -> vector<16x64xf32>
    %7 = arith.addf %3, %6 : vector<16x64xf32>
    %c0_6 = arith.constant 0 : index
    %c0_7 = arith.constant 0 : index
    %8 = vector.load %arg7[%c0_6, %c0_7] : memref<16x64xf32, #tpu.memory_space<vmem>>, vector<16x64xf32>
    tpu.vector_store %arg7[%c0_6, %c0_7], %7 {strides = array<i32>} : memref<16x64xf32, #tpu.memory_space<vmem>>, vector<16x64xf32>,
    %c0_i32_8 = arith.constant 0 : i32
    %9 = arith.cmpi eq, %arg2, %c0_i32_8 : i32
    %10 = arith.extui %9 : i1 to i32
    %c0_i32_9 = arith.constant 0 : i32
    %11 = arith.cmpi ne, %10, %c0_i32_9 : i32
    scf.if %11 {
      %c0_10 = arith.constant 0 : index
      %c0_11 = arith.constant 0 : index
      %12 = vector.load %arg7[%c0_10, %c0_11] : memref<16x64xf32, #tpu.memory_space<vmem>>, vector<16x64xf32>
      %c0_12 = arith.constant 0 : index
      %c0_13 = arith.constant 0 : index
      %13 = vector.load %arg5[%c0_12, %c0_13] : memref<1x64xf32, #tpu.memory_space<vmem>>, vector<1x64xf32>
      %14 = vector.broadcast %13 : vector<1x64xf32> to vector<16x64xf32>
      %15 = arith.addf %12, %14 : vector<16x64xf32>
      %16 = arith.mulf %15, %15 : vector<16x64xf32>
      %17 = arith.mulf %15, %16 : vector<16x64xf32>
      %cst_14 = arith.constant 4.471500e-02 : f32
      %18 = vector.broadcast %cst_14 : f32 to vector<16x64xf32>
      %19 = arith.mulf %18, %17 : vector<16x64xf32>
      %20 = arith.addf %15, %19 : vector<16x64xf32>
      %cst_15 = arith.constant 0.797884583 : f32
      %21 = vector.broadcast %cst_15 : f32 to vector<16x64xf32>
      %22 = arith.mulf %21, %20 : vector<16x64xf32>
      %23 = math.tanh %22 : vector<16x64xf32>
      %cst_16 = arith.constant 1.000000e+00 : f32
      %24 = vector.broadcast %cst_16 : f32 to vector<16x64xf32>
      %25 = arith.addf %24, %23 : vector<16x64xf32>
      %cst_17 = arith.constant 5.000000e-01 : f32
      %26 = vector.broadcast %cst_17 : f32 to vector<16x64xf32>
      %27 = arith.mulf %26, %25 : vector<16x64xf32>
      %28 = arith.mulf %15, %27 : vector<16x64xf32>
      %29 = arith.truncf %28 : vector<16x64xf32> to vector<16x64xbf16>
      %c0_18 = arith.constant 0 : index
      %c0_19 = arith.constant 0 : index
      %30 = vector.load %arg6[%c0_18, %c0_19] : memref<16x64xbf16, #tpu.memory_space<vmem>>, vector<16x64xbf16>
      tpu.vector_store %arg6[%c0_18, %c0_19], %29 {strides = array<i32>} : memref<16x64xbf16, #tpu.memory_space<vmem>>, vector<16x64xbf16>,
    } else {
    }
    return
  }
  func.func @transform_0(%arg0: i32, %arg1: i32, %arg2: i32) -> (i32, i32) {
    %c0_i32 = arith.constant 0 : i32
    return %arg0, %arg2 : i32, i32
  }
  func.func @transform_1(%arg0: i32, %arg1: i32, %arg2: i32) -> (i32, i32) {
    %c0_i32 = arith.constant 0 : i32
    return %arg2, %arg1 : i32, i32
  }
  func.func @transform_2(%arg0: i32, %arg1: i32, %arg2: i32) -> (i32, i32) {
    %c0_i32 = arith.constant 0 : i32
    %c0_i32_0 = arith.constant 0 : i32
    return %c0_i32, %arg1 : i32, i32
  }
  func.func @transform_3(%arg0: i32, %arg1: i32, %arg2: i32) -> (i32, i32) {
    %c0_i32 = arith.constant 0 : i32
    return %arg0, %arg1 : i32, i32
  }
}

module attributes {stable_mosaic.version = 11 : i64} {
  func.func @_linear_ln_kernel(%arg0: i32, %arg1: i32, %arg2: memref<16x32xbf16, #tpu.memory_space<vmem>>, %arg3: memref<32x32xbf16, #tpu.memory_space<vmem>>, %arg4: memref<1x32xf32, #tpu.memory_space<vmem>>, %arg5: memref<1x32xf32, #tpu.memory_space<vmem>>, %arg6: memref<1x32xf32, #tpu.memory_space<vmem>>, %arg7: memref<16x32xbf16, #tpu.memory_space<vmem>>, %arg8: memref<16x32xf32, #tpu.memory_space<vmem>>) attributes {dimension_semantics = [#tpu.dimension_semantics<parallel>, #tpu.dimension_semantics<arbitrary>], iteration_bounds = array<i64: 1, 1>, scalar_prefetch = 0 : i64, scratch_operands = 1 : i64, tpu.core_type = #tpu.core_type<tc>, window_params = [{transform_indices = @transform_0, window_bounds = array<i64: 16, 32>}, {transform_indices = @transform_1, window_bounds = array<i64: 32, 32>}, {pipeline_mode = #tpu.pipeline_mode<synchronous>, transform_indices = @transform_2, window_bounds = array<i64: 1, 32>}, {pipeline_mode = #tpu.pipeline_mode<synchronous>, transform_indices = @transform_3, window_bounds = array<i64: 1, 32>}, {pipeline_mode = #tpu.pipeline_mode<synchronous>, transform_indices = @transform_4, window_bounds = array<i64: 1, 32>}, {transform_indices = @transform_5, window_bounds = array<i64: 16, 32>}]} {
    %c0_i32 = arith.constant 0 : i32
    %0 = arith.cmpi eq, %arg1, %c0_i32 : i32
    %1 = arith.extui %0 : i1 to i32
    %c0_i32_0 = arith.constant 0 : i32
    %2 = arith.cmpi ne, %1, %c0_i32_0 : i32
    scf.if %2 {
      %cst_10 = arith.constant 0.000000e+00 : f32
      %12 = vector.broadcast %cst_10 : f32 to vector<16x32xf32>
      %c0_11 = arith.constant 0 : index
      %c0_12 = arith.constant 0 : index
      %13 = vector.load %arg8[%c0_11, %c0_12] : memref<16x32xf32, #tpu.memory_space<vmem>>, vector<16x32xf32>
      tpu.vector_store %arg8[%c0_11, %c0_12], %12 {strides = array<i32>} : memref<16x32xf32, #tpu.memory_space<vmem>>, vector<16x32xf32>,
    } else {
    }
    %c0 = arith.constant 0 : index
    %c0_1 = arith.constant 0 : index
    %3 = vector.load %arg8[%c0, %c0_1] : memref<16x32xf32, #tpu.memory_space<vmem>>, vector<16x32xf32>
    %c0_2 = arith.constant 0 : index
    %c0_3 = arith.constant 0 : index
    %4 = vector.load %arg2[%c0_2, %c0_3] : memref<16x32xbf16, #tpu.memory_space<vmem>>, vector<16x32xbf16>
    %c0_4 = arith.constant 0 : index
    %c0_5 = arith.constant 0 : index
    %5 = vector.load %arg3[%c0_4, %c0_5] : memref<32x32xbf16, #tpu.memory_space<vmem>>, vector<32x32xbf16>
    %cst = arith.constant dense<0.000000e+00> : vector<16x32xf32>
    %6 = tpu.matmul %4, %5, %cst {dimension_numbers = #tpu.dot_dimension_numbers<[1], [0], [0], [1], [0, 0, 1, 1], [], []>} : vector<16x32xbf16>, vector<32x32xbf16>, vector<16x32xf32> -> vector<16x32xf32>
    %7 = arith.addf %3, %6 : vector<16x32xf32>
    %c0_6 = arith.constant 0 : index
    %c0_7 = arith.constant 0 : index
    %8 = vector.load %arg8[%c0_6, %c0_7] : memref<16x32xf32, #tpu.memory_space<vmem>>, vector<16x32xf32>
    tpu.vector_store %arg8[%c0_6, %c0_7], %7 {strides = array<i32>} : memref<16x32xf32, #tpu.memory_space<vmem>>, vector<16x32xf32>,
    %c0_i32_8 = arith.constant 0 : i32
    %9 = arith.cmpi eq, %arg1, %c0_i32_8 : i32
    %10 = arith.extui %9 : i1 to i32
    %c0_i32_9 = arith.constant 0 : i32
    %11 = arith.cmpi ne, %10, %c0_i32_9 : i32
    scf.if %11 {
      %c0_10 = arith.constant 0 : index
      %c0_11 = arith.constant 0 : index
      %12 = vector.load %arg8[%c0_10, %c0_11] : memref<16x32xf32, #tpu.memory_space<vmem>>, vector<16x32xf32>
      %c0_12 = arith.constant 0 : index
      %c0_13 = arith.constant 0 : index
      %13 = vector.load %arg4[%c0_12, %c0_13] : memref<1x32xf32, #tpu.memory_space<vmem>>, vector<1x32xf32>
      %14 = vector.broadcast %13 : vector<1x32xf32> to vector<16x32xf32>
      %15 = arith.addf %12, %14 : vector<16x32xf32>
      %16 = arith.mulf %15, %15 : vector<16x32xf32>
      %17 = arith.mulf %15, %16 : vector<16x32xf32>
      %cst_14 = arith.constant 4.471500e-02 : f32
      %18 = vector.broadcast %cst_14 : f32 to vector<16x32xf32>
      %19 = arith.mulf %18, %17 : vector<16x32xf32>
      %20 = arith.addf %15, %19 : vector<16x32xf32>
      %cst_15 = arith.constant 0.797884583 : f32
      %21 = vector.broadcast %cst_15 : f32 to vector<16x32xf32>
      %22 = arith.mulf %21, %20 : vector<16x32xf32>
      %23 = math.tanh %22 : vector<16x32xf32>
      %cst_16 = arith.constant 1.000000e+00 : f32
      %24 = vector.broadcast %cst_16 : f32 to vector<16x32xf32>
      %25 = arith.addf %24, %23 : vector<16x32xf32>
      %cst_17 = arith.constant 5.000000e-01 : f32
      %26 = vector.broadcast %cst_17 : f32 to vector<16x32xf32>
      %27 = arith.mulf %26, %25 : vector<16x32xf32>
      %28 = arith.mulf %15, %27 : vector<16x32xf32>
      %cst_18 = arith.constant dense<0.000000e+00> : vector<16xf32>
      %29 = vector.multi_reduction <add>, %28, %cst_18 [1] : vector<16x32xf32> to vector<16xf32>
      %30 = vector.shape_cast %29 : vector<16xf32> to vector<16x1xf32>
      %cst_19 = arith.constant 3.200000e+01 : f32
      %31 = vector.broadcast %cst_19 : f32 to vector<16x1xf32>
      %32 = arith.divf %30, %31 : vector<16x1xf32>
      %33 = vector.broadcast %32 : vector<16x1xf32> to vector<16x32xf32>
      %34 = arith.subf %28, %33 : vector<16x32xf32>
      %35 = arith.mulf %34, %34 : vector<16x32xf32>
      %cst_20 = arith.constant dense<0.000000e+00> : vector<16xf32>
      %36 = vector.multi_reduction <add>, %35, %cst_20 [1] : vector<16x32xf32> to vector<16xf32>
      %37 = vector.shape_cast %36 : vector<16xf32> to vector<16x1xf32>
      %cst_21 = arith.constant 3.200000e+01 : f32
      %38 = vector.broadcast %cst_21 : f32 to vector<16x1xf32>
      %39 = arith.divf %37, %38 : vector<16x1xf32>
      %cst_22 = arith.constant 9.99999996E-13 : f32
      %40 = vector.broadcast %cst_22 : f32 to vector<16x1xf32>
      %41 = arith.addf %39, %40 : vector<16x1xf32>
      %42 = math.rsqrt %41 : vector<16x1xf32>
      %43 = vector.broadcast %32 : vector<16x1xf32> to vector<16x32xf32>
      %44 = arith.subf %28, %43 : vector<16x32xf32>
      %45 = vector.broadcast %42 : vector<16x1xf32> to vector<16x32xf32>
      %46 = arith.mulf %44, %45 : vector<16x32xf32>
      %c0_23 = arith.constant 0 : index
      %c0_24 = arith.constant 0 : index
      %47 = vector.load %arg5[%c0_23, %c0_24] : memref<1x32xf32, #tpu.memory_space<vmem>>, vector<1x32xf32>
      %48 = vector.broadcast %47 : vector<1x32xf32> to vector<16x32xf32>
      %49 = arith.mulf %46, %48 : vector<16x32xf32>
      %c0_25 = arith.constant 0 : index
      %c0_26 = arith.constant 0 : index
      %50 = vector.load %arg6[%c0_25, %c0_26] : memref<1x32xf32, #tpu.memory_space<vmem>>, vector<1x32xf32>
      %51 = vector.broadcast %50 : vector<1x32xf32> to vector<16x32xf32>
      %52 = arith.addf %49, %51 : vector<16x32xf32>
      %53 = arith.truncf %52 : vector<16x32xf32> to vector<16x32xbf16>
      %c0_27 = arith.constant 0 : index
      %c0_28 = arith.constant 0 : index
      %54 = vector.load %arg7[%c0_27, %c0_28] : memref<16x32xbf16, #tpu.memory_space<vmem>>, vector<16x32xbf16>
      tpu.vector_store %arg7[%c0_27, %c0_28], %53 {strides = array<i32>} : memref<16x32xbf16, #tpu.memory_space<vmem>>, vector<16x32xbf16>,
    } else {
    }
    return
  }
  func.func @transform_0(%arg0: i32, %arg1: i32) -> (i32, i32) {
    %c0_i32 = arith.constant 0 : i32
    return %arg0, %arg1 : i32, i32
  }
  func.func @transform_1(%arg0: i32, %arg1: i32) -> (i32, i32) {
    %c0_i32 = arith.constant 0 : i32
    %c0_i32_0 = arith.constant 0 : i32
    return %arg1, %c0_i32 : i32, i32
  }
  func.func @transform_2(%arg0: i32, %arg1: i32) -> (i32, i32) {
    %c0_i32 = arith.constant 0 : i32
    %c0_i32_0 = arith.constant 0 : i32
    %c0_i32_1 = arith.constant 0 : i32
    return %c0_i32, %c0_i32_0 : i32, i32
  }
  func.func @transform_3(%arg0: i32, %arg1: i32) -> (i32, i32) {
    %c0_i32 = arith.constant 0 : i32
    %c0_i32_0 = arith.constant 0 : i32
    %c0_i32_1 = arith.constant 0 : i32
    return %c0_i32, %c0_i32_0 : i32, i32
  }
  func.func @transform_4(%arg0: i32, %arg1: i32) -> (i32, i32) {
    %c0_i32 = arith.constant 0 : i32
    %c0_i32_0 = arith.constant 0 : i32
    %c0_i32_1 = arith.constant 0 : i32
    return %c0_i32, %c0_i32_0 : i32, i32
  }
  func.func @transform_5(%arg0: i32, %arg1: i32) -> (i32, i32) {
    %c0_i32 = arith.constant 0 : i32
    %c0_i32_0 = arith.constant 0 : i32
    return %arg0, %c0_i32 : i32, i32
  }
}

module attributes {stable_mosaic.version = 11 : i64} {
  func.func @_linear_ln_kernel(%arg0: i32, %arg1: i32, %arg2: memref<16x64xbf16, #tpu.memory_space<vmem>>, %arg3: memref<64x32xbf16, #tpu.memory_space<vmem>>, %arg4: memref<1x32xf32, #tpu.memory_space<vmem>>, %arg5: memref<16x32xbf16, #tpu.memory_space<vmem>>, %arg6: memref<1x32xf32, #tpu.memory_space<vmem>>, %arg7: memref<1x32xf32, #tpu.memory_space<vmem>>, %arg8: memref<16x32xbf16, #tpu.memory_space<vmem>>, %arg9: memref<16x32xf32, #tpu.memory_space<vmem>>) attributes {dimension_semantics = [#tpu.dimension_semantics<parallel>, #tpu.dimension_semantics<arbitrary>], iteration_bounds = array<i64: 1, 1>, scalar_prefetch = 0 : i64, scratch_operands = 1 : i64, tpu.core_type = #tpu.core_type<tc>, window_params = [{transform_indices = @transform_0, window_bounds = array<i64: 16, 64>}, {transform_indices = @transform_1, window_bounds = array<i64: 64, 32>}, {pipeline_mode = #tpu.pipeline_mode<synchronous>, transform_indices = @transform_2, window_bounds = array<i64: 1, 32>}, {transform_indices = @transform_3, window_bounds = array<i64: 16, 32>}, {pipeline_mode = #tpu.pipeline_mode<synchronous>, transform_indices = @transform_4, window_bounds = array<i64: 1, 32>}, {pipeline_mode = #tpu.pipeline_mode<synchronous>, transform_indices = @transform_5, window_bounds = array<i64: 1, 32>}, {transform_indices = @transform_6, window_bounds = array<i64: 16, 32>}]} {
    %c0_i32 = arith.constant 0 : i32
    %0 = arith.cmpi eq, %arg1, %c0_i32 : i32
    %1 = arith.extui %0 : i1 to i32
    %c0_i32_0 = arith.constant 0 : i32
    %2 = arith.cmpi ne, %1, %c0_i32_0 : i32
    scf.if %2 {
      %cst_10 = arith.constant 0.000000e+00 : f32
      %12 = vector.broadcast %cst_10 : f32 to vector<16x32xf32>
      %c0_11 = arith.constant 0 : index
      %c0_12 = arith.constant 0 : index
      %13 = vector.load %arg9[%c0_11, %c0_12] : memref<16x32xf32, #tpu.memory_space<vmem>>, vector<16x32xf32>
      tpu.vector_store %arg9[%c0_11, %c0_12], %12 {strides = array<i32>} : memref<16x32xf32, #tpu.memory_space<vmem>>, vector<16x32xf32>,
    } else {
    }
    %c0 = arith.constant 0 : index
    %c0_1 = arith.constant 0 : index
    %3 = vector.load %arg9[%c0, %c0_1] : memref<16x32xf32, #tpu.memory_space<vmem>>, vector<16x32xf32>
    %c0_2 = arith.constant 0 : index
    %c0_3 = arith.constant 0 : index
    %4 = vector.load %arg2[%c0_2, %c0_3] : memref<16x64xbf16, #tpu.memory_space<vmem>>, vector<16x64xbf16>
    %c0_4 = arith.constant 0 : index
    %c0_5 = arith.constant 0 : index
    %5 = vector.load %arg3[%c0_4, %c0_5] : memref<64x32xbf16, #tpu.memory_space<vmem>>, vector<64x32xbf16>
    %cst = arith.constant dense<0.000000e+00> : vector<16x32xf32>
    %6 = tpu.matmul %4, %5, %cst {dimension_numbers = #tpu.dot_dimension_numbers<[1], [0], [0], [1], [0, 0, 1, 1], [], []>} : vector<16x64xbf16>, vector<64x32xbf16>, vector<16x32xf32> -> vector<16x32xf32>
    %7 = arith.addf %3, %6 : vector<16x32xf32>
    %c0_6 = arith.constant 0 : index
    %c0_7 = arith.constant 0 : index
    %8 = vector.load %arg9[%c0_6, %c0_7] : memref<16x32xf32, #tpu.memory_space<vmem>>, vector<16x32xf32>
    tpu.vector_store %arg9[%c0_6, %c0_7], %7 {strides = array<i32>} : memref<16x32xf32, #tpu.memory_space<vmem>>, vector<16x32xf32>,
    %c0_i32_8 = arith.constant 0 : i32
    %9 = arith.cmpi eq, %arg1, %c0_i32_8 : i32
    %10 = arith.extui %9 : i1 to i32
    %c0_i32_9 = arith.constant 0 : i32
    %11 = arith.cmpi ne, %10, %c0_i32_9 : i32
    scf.if %11 {
      %c0_10 = arith.constant 0 : index
      %c0_11 = arith.constant 0 : index
      %12 = vector.load %arg9[%c0_10, %c0_11] : memref<16x32xf32, #tpu.memory_space<vmem>>, vector<16x32xf32>
      %c0_12 = arith.constant 0 : index
      %c0_13 = arith.constant 0 : index
      %13 = vector.load %arg4[%c0_12, %c0_13] : memref<1x32xf32, #tpu.memory_space<vmem>>, vector<1x32xf32>
      %14 = vector.broadcast %13 : vector<1x32xf32> to vector<16x32xf32>
      %15 = arith.addf %12, %14 : vector<16x32xf32>
      %c0_14 = arith.constant 0 : index
      %c0_15 = arith.constant 0 : index
      %16 = vector.load %arg5[%c0_14, %c0_15] : memref<16x32xbf16, #tpu.memory_space<vmem>>, vector<16x32xbf16>
      %17 = arith.extf %16 : vector<16x32xbf16> to vector<16x32xf32>
      %18 = arith.addf %15, %17 : vector<16x32xf32>
      %cst_16 = arith.constant dense<0.000000e+00> : vector<16xf32>
      %19 = vector.multi_reduction <add>, %18, %cst_16 [1] : vector<16x32xf32> to vector<16xf32>
      %20 = vector.shape_cast %19 : vector<16xf32> to vector<16x1xf32>
      %cst_17 = arith.constant 3.200000e+01 : f32
      %21 = vector.broadcast %cst_17 : f32 to vector<16x1xf32>
      %22 = arith.divf %20, %21 : vector<16x1xf32>
      %23 = vector.broadcast %22 : vector<16x1xf32> to vector<16x32xf32>
      %24 = arith.subf %18, %23 : vector<16x32xf32>
      %25 = arith.mulf %24, %24 : vector<16x32xf32>
      %cst_18 = arith.constant dense<0.000000e+00> : vector<16xf32>
      %26 = vector.multi_reduction <add>, %25, %cst_18 [1] : vector<16x32xf32> to vector<16xf32>
      %27 = vector.shape_cast %26 : vector<16xf32> to vector<16x1xf32>
      %cst_19 = arith.constant 3.200000e+01 : f32
      %28 = vector.broadcast %cst_19 : f32 to vector<16x1xf32>
      %29 = arith.divf %27, %28 : vector<16x1xf32>
      %cst_20 = arith.constant 9.99999996E-13 : f32
      %30 = vector.broadcast %cst_20 : f32 to vector<16x1xf32>
      %31 = arith.addf %29, %30 : vector<16x1xf32>
      %32 = math.rsqrt %31 : vector<16x1xf32>
      %33 = vector.broadcast %22 : vector<16x1xf32> to vector<16x32xf32>
      %34 = arith.subf %18, %33 : vector<16x32xf32>
      %35 = vector.broadcast %32 : vector<16x1xf32> to vector<16x32xf32>
      %36 = arith.mulf %34, %35 : vector<16x32xf32>
      %c0_21 = arith.constant 0 : index
      %c0_22 = arith.constant 0 : index
      %37 = vector.load %arg6[%c0_21, %c0_22] : memref<1x32xf32, #tpu.memory_space<vmem>>, vector<1x32xf32>
      %38 = vector.broadcast %37 : vector<1x32xf32> to vector<16x32xf32>
      %39 = arith.mulf %36, %38 : vector<16x32xf32>
      %c0_23 = arith.constant 0 : index
      %c0_24 = arith.constant 0 : index
      %40 = vector.load %arg7[%c0_23, %c0_24] : memref<1x32xf32, #tpu.memory_space<vmem>>, vector<1x32xf32>
      %41 = vector.broadcast %40 : vector<1x32xf32> to vector<16x32xf32>
      %42 = arith.addf %39, %41 : vector<16x32xf32>
      %43 = arith.truncf %42 : vector<16x32xf32> to vector<16x32xbf16>
      %c0_25 = arith.constant 0 : index
      %c0_26 = arith.constant 0 : index
      %44 = vector.load %arg8[%c0_25, %c0_26] : memref<16x32xbf16, #tpu.memory_space<vmem>>, vector<16x32xbf16>
      tpu.vector_store %arg8[%c0_25, %c0_26], %43 {strides = array<i32>} : memref<16x32xbf16, #tpu.memory_space<vmem>>, vector<16x32xbf16>,
    } else {
    }
    return
  }
  func.func @transform_0(%arg0: i32, %arg1: i32) -> (i32, i32) {
    %c0_i32 = arith.constant 0 : i32
    return %arg0, %arg1 : i32, i32
  }
  func.func @transform_1(%arg0: i32, %arg1: i32) -> (i32, i32) {
    %c0_i32 = arith.constant 0 : i32
    %c0_i32_0 = arith.constant 0 : i32
    return %arg1, %c0_i32 : i32, i32
  }
  func.func @transform_2(%arg0: i32, %arg1: i32) -> (i32, i32) {
    %c0_i32 = arith.constant 0 : i32
    %c0_i32_0 = arith.constant 0 : i32
    %c0_i32_1 = arith.constant 0 : i32
    return %c0_i32, %c0_i32_0 : i32, i32
  }
  func.func @transform_3(%arg0: i32, %arg1: i32) -> (i32, i32) {
    %c0_i32 = arith.constant 0 : i32
    %c0_i32_0 = arith.constant 0 : i32
    return %arg0, %c0_i32 : i32, i32
  }
  func.func @transform_4(%arg0: i32, %arg1: i32) -> (i32, i32) {
    %c0_i32 = arith.constant 0 : i32
    %c0_i32_0 = arith.constant 0 : i32
    %c0_i32_1 = arith.constant 0 : i32
    return %c0_i32, %c0_i32_0 : i32, i32
  }
  func.func @transform_5(%arg0: i32, %arg1: i32) -> (i32, i32) {
    %c0_i32 = arith.constant 0 : i32
    %c0_i32_0 = arith.constant 0 : i32
    %c0_i32_1 = arith.constant 0 : i32
    return %c0_i32, %c0_i32_0 : i32, i32
  }
  func.func @transform_6(%arg0: i32, %arg1: i32) -> (i32, i32) {
    %c0_i32 = arith.constant 0 : i32
    %c0_i32_0 = arith.constant 0 : i32
    return %arg0, %c0_i32 : i32, i32
  }
}

module attributes {stable_mosaic.version = 11 : i64} {
  func.func @_linear_kernel(%arg0: i32, %arg1: i32, %arg2: i32, %arg3: memref<16x32xbf16, #tpu.memory_space<vmem>>, %arg4: memref<32x256xbf16, #tpu.memory_space<vmem>>, %arg5: memref<1x256xf32, #tpu.memory_space<vmem>>, %arg6: memref<16x256xf32, #tpu.memory_space<vmem>>, %arg7: memref<16x256xf32, #tpu.memory_space<vmem>>) attributes {dimension_semantics = [#tpu.dimension_semantics<parallel>, #tpu.dimension_semantics<parallel>, #tpu.dimension_semantics<arbitrary>], iteration_bounds = array<i64: 1, 1, 1>, scalar_prefetch = 0 : i64, scratch_operands = 1 : i64, tpu.core_type = #tpu.core_type<tc>, window_params = [{transform_indices = @transform_0, window_bounds = array<i64: 16, 32>}, {transform_indices = @transform_1, window_bounds = array<i64: 32, 256>}, {transform_indices = @transform_2, window_bounds = array<i64: 1, 256>}, {transform_indices = @transform_3, window_bounds = array<i64: 16, 256>}]} {
    %c0_i32 = arith.constant 0 : i32
    %0 = arith.cmpi eq, %arg2, %c0_i32 : i32
    %1 = arith.extui %0 : i1 to i32
    %c0_i32_0 = arith.constant 0 : i32
    %2 = arith.cmpi ne, %1, %c0_i32_0 : i32
    scf.if %2 {
      %cst_10 = arith.constant 0.000000e+00 : f32
      %12 = vector.broadcast %cst_10 : f32 to vector<16x256xf32>
      %c0_11 = arith.constant 0 : index
      %c0_12 = arith.constant 0 : index
      %13 = vector.load %arg7[%c0_11, %c0_12] : memref<16x256xf32, #tpu.memory_space<vmem>>, vector<16x256xf32>
      tpu.vector_store %arg7[%c0_11, %c0_12], %12 {strides = array<i32>} : memref<16x256xf32, #tpu.memory_space<vmem>>, vector<16x256xf32>,
    } else {
    }
    %c0 = arith.constant 0 : index
    %c0_1 = arith.constant 0 : index
    %3 = vector.load %arg7[%c0, %c0_1] : memref<16x256xf32, #tpu.memory_space<vmem>>, vector<16x256xf32>
    %c0_2 = arith.constant 0 : index
    %c0_3 = arith.constant 0 : index
    %4 = vector.load %arg3[%c0_2, %c0_3] : memref<16x32xbf16, #tpu.memory_space<vmem>>, vector<16x32xbf16>
    %c0_4 = arith.constant 0 : index
    %c0_5 = arith.constant 0 : index
    %5 = vector.load %arg4[%c0_4, %c0_5] : memref<32x256xbf16, #tpu.memory_space<vmem>>, vector<32x256xbf16>
    %cst = arith.constant dense<0.000000e+00> : vector<16x256xf32>
    %6 = tpu.matmul %4, %5, %cst {dimension_numbers = #tpu.dot_dimension_numbers<[1], [0], [0], [1], [0, 0, 1, 1], [], []>} : vector<16x32xbf16>, vector<32x256xbf16>, vector<16x256xf32> -> vector<16x256xf32>
    %7 = arith.addf %3, %6 : vector<16x256xf32>
    %c0_6 = arith.constant 0 : index
    %c0_7 = arith.constant 0 : index
    %8 = vector.load %arg7[%c0_6, %c0_7] : memref<16x256xf32, #tpu.memory_space<vmem>>, vector<16x256xf32>
    tpu.vector_store %arg7[%c0_6, %c0_7], %7 {strides = array<i32>} : memref<16x256xf32, #tpu.memory_space<vmem>>, vector<16x256xf32>,
    %c0_i32_8 = arith.constant 0 : i32
    %9 = arith.cmpi eq, %arg2, %c0_i32_8 : i32
    %10 = arith.extui %9 : i1 to i32
    %c0_i32_9 = arith.constant 0 : i32
    %11 = arith.cmpi ne, %10, %c0_i32_9 : i32
    scf.if %11 {
      %c0_10 = arith.constant 0 : index
      %c0_11 = arith.constant 0 : index
      %12 = vector.load %arg7[%c0_10, %c0_11] : memref<16x256xf32, #tpu.memory_space<vmem>>, vector<16x256xf32>
      %c0_12 = arith.constant 0 : index
      %c0_13 = arith.constant 0 : index
      %13 = vector.load %arg5[%c0_12, %c0_13] : memref<1x256xf32, #tpu.memory_space<vmem>>, vector<1x256xf32>
      %14 = vector.broadcast %13 : vector<1x256xf32> to vector<16x256xf32>
      %15 = arith.addf %12, %14 : vector<16x256xf32>
      %c0_14 = arith.constant 0 : index
      %c0_15 = arith.constant 0 : index
      %16 = vector.load %arg6[%c0_14, %c0_15] : memref<16x256xf32, #tpu.memory_space<vmem>>, vector<16x256xf32>
      tpu.vector_store %arg6[%c0_14, %c0_15], %15 {strides = array<i32>} : memref<16x256xf32, #tpu.memory_space<vmem>>, vector<16x256xf32>,
    } else {
    }
    return
  }
  func.func @transform_0(%arg0: i32, %arg1: i32, %arg2: i32) -> (i32, i32) {
    %c0_i32 = arith.constant 0 : i32
    return %arg0, %arg2 : i32, i32
  }
  func.func @transform_1(%arg0: i32, %arg1: i32, %arg2: i32) -> (i32, i32) {
    %c0_i32 = arith.constant 0 : i32
    return %arg2, %arg1 : i32, i32
  }
  func.func @transform_2(%arg0: i32, %arg1: i32, %arg2: i32) -> (i32, i32) {
    %c0_i32 = arith.constant 0 : i32
    %c0_i32_0 = arith.constant 0 : i32
    return %c0_i32, %arg1 : i32, i32
  }
  func.func @transform_3(%arg0: i32, %arg1: i32, %arg2: i32) -> (i32, i32) {
    %c0_i32 = arith.constant 0 : i32
    return %arg0, %arg1 : i32, i32
  }
}

</mosaic_0001>

<bundles_post_ra>
// kernel: bert_forward.14
= control target key start
LH: loop header
LB: loop body
LE: loop exit
PB: predicated region body
PF: predicated region fallthrough
CT: control target
= control target key end

     0   :  { %vm19_vm0 = vcmask 785408   ;;  %v108_v1 = vmov 0.0   ;;  %vm47_vm1 = vcmask 261120   ;;  %vm83_vm2 = vcmask 781312   ;;  %s151_s1 = inlined_call_operand.vmem [shape: bf16[32,96], index: 1, kind: input, shape index: {}]   ;;  %s152_s2 = inlined_call_operand.vmem [shape: f32[1,96], index: 2, kind: input, shape index: {}]   ;;  %s153_s0 = inlined_call_operand.vmem [shape: bf16[16,32], index: 0, kind: input, shape index: {}]   ;;  %s154_s3 = inlined_call_operand.vmem [shape: bf16[16,96], index: 3, kind: output, shape index: {}]  }
   0x1   :  { %v105_v0 = vld [vmem:[%s151_s1 + $0x8] sm:$0xff]  ;;  %20 = vst.msk [vmem:[#allocation2] sm:$0xff] %vm19_vm0, %v108_v1  ;;  %v104_v2 = vld [vmem:[%s151_s1] sm:$0xff] }
   0x2   :  { %21 = vst.msk [vmem:[#allocation2 + $0x8] sm:$0xff] %vm19_vm0, %v108_v1  ;;  %57 = vmatpush.bf16.msra.mxu0 %v105_v0  ;;  %v103_v3 = vld [vmem:[%s153_s0] sm:$0xff] }
   0x3   :  { %v107_v8 = vld [vmem:[%s152_s2] ss:$0 sm:$0xff] }
   0x6   :  { %58 = vmatpush.bf16.msra.mxu0 %v104_v2 }
   0x8   :  { %v22_v4 = vld [vmem:[#allocation2] sm:$0xff] }
   0x9   :  { %102 = vmatmul.msk.bf16.vlgmr.msra.gmra.mxu0 %vm47_vm1, %v103_v3  ;;  %v23_v7 = vld [vmem:[#allocation2 + $0x8] sm:$0xff] }
  0x86   :  { %v60_v5 = vpop.f32.mrf.mxu0 }
  0x87   :  { %v65_v6 = vadd.f32 %v60_v5, %v22_v4 }
  0x89   :  { %68 = vst.msk [vmem:[#allocation2] sm:$0xff] %vm19_vm0, %v65_v6 }
  0x8e   :  { %v62_v9 = vpop.f32.mrf.mxu0 }
  0x8f   :  { %v66_v10 = vadd.f32 %v62_v9, %v23_v7 }
  0x90   :  { %v73_v11 = vld [vmem:[#allocation2] sm:$0xff] }
  0x91   :  { %v79_v12 = vadd.f32 %v107_v8, %v73_v11  ;;  %69 = vst.msk [vmem:[#allocation2 + $0x8] sm:$0xff] %vm19_vm0, %v66_v10 }
  0x93   :  { %v81_v13 = vpack.c.bf16 %v79_v12, %v79_v12 }
  0x95   :  { %84 = vst.msk [vmem:[%s154_s3] sm:$0xf] %vm83_vm2, %v81_v13 }
  0x98   :  { %v74_v14 = vld [vmem:[#allocation2 + $0x8] sm:$0xff] }
  0x99   :  { %v80_v15 = vadd.f32 %v107_v8, %v74_v14 }
  0x9b   :  { %v82_v16 = vpack.c.bf16 %v80_v15, %v80_v15 }
  0x9d   :  { %85 = vst.msk [vmem:[%s154_s3 + $0x4] sm:$0xf] %vm83_vm2, %v82_v16 }

// kernel: bert_forward.13
= control target key start
LH: loop header
LB: loop body
LE: loop exit
PB: predicated region body
PF: predicated region fallthrough
CT: control target
= control target key end

     0   :  { %vm16_vm0 = vcmask 261120   ;;  %v98_v4 = vmov 32.0   ;;  %vm82_vm6 = vcmask 257024   ;;  %s141_s0 = inlined_call_operand.vmem [shape: f32[16,32], index: 0, kind: input, shape index: {}]   ;;  %s142_s1 = inlined_call_operand.vmem [shape: f32[1,32], index: 1, kind: input, shape index: {}]   ;;  %s143_s2 = inlined_call_operand.vmem [shape: f32[1,32], index: 2, kind: input, shape index: {}]   ;;  %s144_s3 = inlined_call_operand.vmem [shape: bf16[16,32], index: 3, kind: output, shape index: {}]  }
   0x1   :  { %v14_v0 = vld [vmem:[%s141_s0] sm:$0xff]  ;;  %v15_v2 = vld [vmem:[%s141_s0 + $0x8] sm:$0xff]  ;;  %92 = vrcp.f32 %v98_v4 }
   0x2   :  { %v17_v1 = vsel %vm16_vm0, %v14_v0, 0.0  ;;  %v20_v3 = vsel %vm16_vm0, %v15_v2, 0.0  ;;  %v90_v35 = vld [vmem:[%s142_s1] ss:$0 sm:$0xff] }
   0x3   :  { %18 = vadd.xlane.f32.xlu0 %v17_v1  ;;  %v91_v38 = vld [vmem:[%s143_s2] ss:$0 sm:$0xff] }
   0x7   :  { %v93_v5 = vpop.eup %92 }
   0x8   :  { %v24_v6 = vmul.f32 32.0, %v93_v5  ;;  %vm28_vm1 = vweird.f32 %v93_v5 }
   0xa   :  { %v25_v7 = vsub.f32 1.0, %v24_v6 }
   0xb   :  { %21 = vadd.xlane.f32.xlu0 %v20_v3 }
   0xc   :  { %v26_v8 = vmul.f32 %v93_v5, %v25_v7 }
   0xe   :  { %v27_v9 = vadd.f32 %v93_v5, %v26_v8 }
  0x10   :  { %v29_v10 = vsel %vm28_vm1, %v93_v5, %v27_v9 }
  0x76   :  { %v19_v11 = vpop.xlane.xlu0 %18 }
  0x77   :  { %v30_v12 = vmul.f32 %v29_v10, %v19_v11 }
  0x79   :  { %v32_v13 = vsub.f32 %v14_v0, %v30_v12 }
  0x7b   :  { %v34_v14 = vmul.f32 %v32_v13, %v32_v13 }
  0x7d   :  { %v36_v15 = vsel %vm16_vm0, %v34_v14, 0.0 }
  0x7e   :  { %37 = vadd.xlane.f32.xlu1 %v36_v15  ;;  %v22_v16 = vpop.xlane.xlu0 %21 }
  0x7f   :  { %v31_v17 = vmul.f32 %v29_v10, %v22_v16 }
  0x81   :  { %v33_v18 = vsub.f32 %v15_v2, %v31_v17 }
  0x83   :  { %v35_v19 = vmul.f32 %v33_v18, %v33_v18 }
  0x85   :  { %v39_v20 = vsel %vm16_vm0, %v35_v19, 0.0 }
  0x86   :  { %40 = vadd.xlane.f32.xlu1 %v39_v20 }
  0xf1   :  { %v38_v21 = vpop.xlane.xlu1 %37 }
  0xf2   :  { %v42_v22 = vmul.f32 %v38_v21, %v29_v10 }
  0xf4   :  { %v44_v23 = vadd.f32 1e-12, %v42_v22 }
  0xf6   :  { %94 = vrsqrt.f32 %v44_v23  ;;  %vm52_vm3 = vweird.f32 %v44_v23 }
  0xf9   :  { %v41_v24 = vpop.xlane.xlu1 %40 }
  0xfa   :  { %v43_v25 = vmul.f32 %v41_v24, %v29_v10 }
  0xfc   :  { %v95_v26 = vpop.eup %94  ;;  %v45_v27 = vadd.f32 1e-12, %v43_v25 }
  0xfd   :  { %v47_v28 = vmul.f32 %v95_v26, %v44_v23  ;;  %vm53_vm2 = vweird.f32 %v95_v26 }
  0xfe   :  { %96 = vrsqrt.f32 %v45_v27  ;;  %vm54_vm4 = vmor %vm52_vm3, %vm53_vm2  ;;  %vm62_vm7 = vweird.f32 %v45_v27 }
  0xff   :  { %v48_v29 = vmul.f32 %v95_v26, %v47_v28 }
 0x101   :  { %v49_v30 = vmul.f32 0.5, %v48_v29 }
 0x103   :  { %v50_v31 = vsub.f32 1.5, %v49_v30 }
 0x104   :  { %v97_v32 = vpop.eup %96 }
 0x105   :  { %v51_v33 = vmul.f32 %v95_v26, %v50_v31  ;;  %v57_v34 = vmul.f32 %v97_v32, %v45_v27  ;;  %vm63_vm5 = vweird.f32 %v97_v32 }
 0x106   :  { %vm64_vm8 = vmor %vm62_vm7, %vm63_vm5 }
 0x107   :  { %v55_v36 = vsel %vm54_vm4, %v95_v26, %v51_v33  ;;  %v58_v37 = vmul.f32 %v97_v32, %v57_v34 }
 0x108   :  { %v66_v39 = vmul.f32 %v55_v36, %v32_v13 }
 0x109   :  { %v59_v40 = vmul.f32 0.5, %v58_v37 }
 0x10a   :  { %v72_v41 = vmul.f32 %v90_v35, %v66_v39 }
 0x10b   :  { %v60_v42 = vsub.f32 1.5, %v59_v40 }
 0x10c   :  { %v78_v43 = vadd.f32 %v91_v38, %v72_v41 }
 0x10d   :  { %v61_v44 = vmul.f32 %v97_v32, %v60_v42 }
 0x10e   :  { %v80_v45 = vpack.c.bf16 %v78_v43, %v78_v43 }
 0x10f   :  { %v65_v46 = vsel %vm64_vm8, %v97_v32, %v61_v44 }
 0x110   :  { %83 = vst.msk [vmem:[%s144_s3] sm:$0xf] %vm82_vm6, %v80_v45  ;;  %v67_v47 = vmul.f32 %v65_v46, %v33_v18 }
 0x112   :  { %v73_v48 = vmul.f32 %v90_v35, %v67_v47 }
 0x114   :  { %v79_v49 = vadd.f32 %v91_v38, %v73_v48 }
 0x116   :  { %v81_v50 = vpack.c.bf16 %v79_v49, %v79_v49 }
 0x118   :  { %84 = vst.msk [vmem:[%s144_s3 + $0x4] sm:$0xf] %vm82_vm6, %v81_v50 }

// kernel: bert_forward.16
= control target key start
LH: loop header
LB: loop body
LE: loop exit
PB: predicated region body
PF: predicated region fallthrough
CT: control target
= control target key end

     0   :  { %vm28_vm0 = vcmask 261120   ;;  %v198_v1 = vmov 0.0   ;;  %v199_v22 = vmov 32.0   ;;  %vm160_vm6 = vcmask 257024   ;;  %s271_s1 = inlined_call_operand.vmem [shape: bf16[32,32], index: 1, kind: input, shape index: {}]   ;;  %s272_s0 = inlined_call_operand.vmem [shape: bf16[16,32], index: 0, kind: input, shape index: {}]   ;;  %s273_s2 = inlined_call_operand.vmem [shape: f32[1,32], index: 2, kind: input, shape index: {}]   ;;  %s274_s3 = inlined_call_operand.vmem [shape: bf16[16,32], index: 3, kind: input, shape index: {}]   ;;  %s275_s4 = inlined_call_operand.vmem [shape: f32[1,32], index: 4, kind: input, shape index: {}]   ;;  %s276_s5 = inlined_call_operand.vmem [shape: f32[1,32], index: 5, kind: input, shape index: {}]   ;;  %s277_s6 = inlined_call_operand.vmem [shape: bf16[16,32], index: 6, kind: output, shape index: {}]  }
   0x1   :  { %v182_v0 = vld [vmem:[%s271_s1 + $0x8] sm:$0xff]  ;;  %29 = vst.msk [vmem:[#allocation2] sm:$0xff] %vm28_vm0, %v198_v1  ;;  %v181_v2 = vld [vmem:[%s271_s1] sm:$0xff]  ;;  %192 = vrcp.f32 %v199_v22 }
   0x2   :  { %30 = vst.msk [vmem:[#allocation2 + $0x8] sm:$0xff] %vm28_vm0, %v198_v1  ;;  %66 = vmatpush.bf16.msra.mxu0 %v182_v0  ;;  %v180_v3 = vld [vmem:[%s272_s0] sm:$0xff] }
   0x3   :  { %v184_v8 = vld [vmem:[%s274_s3] sm:$0xff]  }
   0x4   :  { %v189_v9 = vld [vmem:[%s273_s2] ss:$0 sm:$0xff]  ;;  %v185_v12 = vunpack.c.l.bf16 %v184_v8  ;;  %v186_v17 = vunpack.c.h.bf16 %v184_v8 }
   0x5   :  { %v190_v53 = vld [vmem:[%s275_s4] ss:$0 sm:$0xff] }
   0x6   :  { %67 = vmatpush.bf16.msra.mxu0 %v181_v2  ;;  %v191_v56 = vld [vmem:[%s276_s5] ss:$0 sm:$0xff] }
   0x7   :  { %v193_v23 = vpop.eup %192 }
   0x8   :  { %v31_v4 = vld [vmem:[#allocation2] sm:$0xff]  ;;  %v102_v24 = vmul.f32 32.0, %v193_v23  ;;  %vm106_vm1 = vweird.f32 %v193_v23 }
   0x9   :  { %179 = vmatmul.msk.bf16.vlgmr.msra.gmra.mxu0 %vm28_vm0, %v180_v3  ;;  %v32_v7 = vld [vmem:[#allocation2 + $0x8] sm:$0xff] }
   0xa   :  { %v103_v25 = vsub.f32 1.0, %v102_v24 }
   0xc   :  { %v104_v26 = vmul.f32 %v193_v23, %v103_v25 }
   0xe   :  { %v105_v27 = vadd.f32 %v193_v23, %v104_v26 }
  0x10   :  { %v107_v28 = vsel %vm106_vm1, %v193_v23, %v105_v27 }
  0x86   :  { %v69_v5 = vpop.f32.mrf.mxu0 }
  0x87   :  { %v74_v6 = vadd.f32 %v69_v5, %v31_v4 }
  0x89   :  { %76 = vst.msk [vmem:[#allocation2] sm:$0xff] %vm28_vm0, %v74_v6 }
  0x8e   :  { %v71_v10 = vpop.f32.mrf.mxu0 }
  0x8f   :  { %v75_v11 = vadd.f32 %v71_v10, %v32_v7 }
  0x90   :  { %v81_v13 = vld [vmem:[#allocation2] sm:$0xff] }
  0x91   :  { %77 = vst.msk [vmem:[#allocation2 + $0x8] sm:$0xff] %vm28_vm0, %v75_v11  ;;  %v87_v14 = vadd.f32 %v189_v9, %v81_v13 }
  0x93   :  { %v93_v15 = vadd.f32 %v185_v12, %v87_v14 }
  0x95   :  { %v95_v16 = vsel %vm28_vm0, %v93_v15, 0.0 }
  0x96   :  { %96 = vadd.xlane.f32.xlu0 %v95_v16 }
  0x98   :  { %v82_v18 = vld [vmem:[#allocation2 + $0x8] sm:$0xff] }
  0x99   :  { %v88_v19 = vadd.f32 %v189_v9, %v82_v18 }
  0x9b   :  { %v94_v20 = vadd.f32 %v186_v17, %v88_v19 }
  0x9d   :  { %v98_v21 = vsel %vm28_vm0, %v94_v20, 0.0 }
  0x9e   :  { %99 = vadd.xlane.f32.xlu0 %v98_v21 }
 0x109   :  { %v97_v29 = vpop.xlane.xlu0 %96 }
 0x10a   :  { %v108_v30 = vmul.f32 %v107_v28, %v97_v29 }
 0x10c   :  { %v110_v31 = vsub.f32 %v93_v15, %v108_v30 }
 0x10e   :  { %v112_v32 = vmul.f32 %v110_v31, %v110_v31 }
 0x110   :  { %v114_v33 = vsel %vm28_vm0, %v112_v32, 0.0 }
 0x111   :  { %115 = vadd.xlane.f32.xlu1 %v114_v33  ;;  %v100_v34 = vpop.xlane.xlu0 %99 }
 0x112   :  { %v109_v35 = vmul.f32 %v107_v28, %v100_v34 }
 0x114   :  { %v111_v36 = vsub.f32 %v94_v20, %v109_v35 }
 0x116   :  { %v113_v37 = vmul.f32 %v111_v36, %v111_v36 }
 0x118   :  { %v117_v38 = vsel %vm28_vm0, %v113_v37, 0.0 }
 0x119   :  { %118 = vadd.xlane.f32.xlu1 %v117_v38 }
 0x184   :  { %v116_v39 = vpop.xlane.xlu1 %115 }
 0x185   :  { %v120_v40 = vmul.f32 %v116_v39, %v107_v28 }
 0x187   :  { %v122_v41 = vadd.f32 1e-12, %v120_v40 }
 0x189   :  { %194 = vrsqrt.f32 %v122_v41  ;;  %vm130_vm3 = vweird.f32 %v122_v41 }
 0x18c   :  { %v119_v42 = vpop.xlane.xlu1 %118 }
 0x18d   :  { %v121_v43 = vmul.f32 %v119_v42, %v107_v28 }
 0x18f   :  { %v195_v44 = vpop.eup %194  ;;  %v123_v45 = vadd.f32 1e-12, %v121_v43 }
 0x190   :  { %v125_v46 = vmul.f32 %v195_v44, %v122_v41  ;;  %vm131_vm2 = vweird.f32 %v195_v44 }
 0x191   :  { %196 = vrsqrt.f32 %v123_v45  ;;  %vm132_vm4 = vmor %vm130_vm3, %vm131_vm2  ;;  %vm140_vm7 = vweird.f32 %v123_v45 }
 0x192   :  { %v126_v47 = vmul.f32 %v195_v44, %v125_v46 }
 0x194   :  { %v127_v48 = vmul.f32 0.5, %v126_v47 }
 0x196   :  { %v128_v49 = vsub.f32 1.5, %v127_v48 }
 0x197   :  { %v197_v50 = vpop.eup %196 }
 0x198   :  { %v129_v51 = vmul.f32 %v195_v44, %v128_v49  ;;  %v135_v52 = vmul.f32 %v197_v50, %v123_v45  ;;  %vm141_vm5 = vweird.f32 %v197_v50 }
 0x199   :  { %vm142_vm8 = vmor %vm140_vm7, %vm141_vm5 }
 0x19a   :  { %v133_v54 = vsel %vm132_vm4, %v195_v44, %v129_v51  ;;  %v136_v55 = vmul.f32 %v197_v50, %v135_v52 }
 0x19b   :  { %v144_v57 = vmul.f32 %v133_v54, %v110_v31 }
 0x19c   :  { %v137_v58 = vmul.f32 0.5, %v136_v55 }
 0x19d   :  { %v150_v59 = vmul.f32 %v190_v53, %v144_v57 }
 0x19e   :  { %v138_v60 = vsub.f32 1.5, %v137_v58 }
 0x19f   :  { %v156_v61 = vadd.f32 %v191_v56, %v150_v59 }
 0x1a0   :  { %v139_v62 = vmul.f32 %v197_v50, %v138_v60 }
 0x1a1   :  { %v158_v63 = vpack.c.bf16 %v156_v61, %v156_v61 }
 0x1a2   :  { %v143_v0 = vsel %vm142_vm8, %v197_v50, %v139_v62 }
 0x1a3   :  { %161 = vst.msk [vmem:[%s277_s6] sm:$0xf] %vm160_vm6, %v158_v63  ;;  %v145_v1 = vmul.f32 %v143_v0, %v111_v36 }
 0x1a5   :  { %v151_v2 = vmul.f32 %v190_v53, %v145_v1 }
 0x1a7   :  { %v157_v3 = vadd.f32 %v191_v56, %v151_v2 }
 0x1a9   :  { %v159_v4 = vpack.c.bf16 %v157_v3, %v157_v3 }
 0x1ab   :  { %162 = vst.msk [vmem:[%s277_s6 + $0x4] sm:$0xf] %vm160_vm6, %v159_v4 }

// kernel: bert_forward.15
= control target key start
LH: loop header
LB: loop body
LE: loop exit
PB: predicated region body
PF: predicated region fallthrough
CT: control target
= control target key end

     0   :  { %s565_s9 = smov 0   ;;  %s636_s0 = inlined_call_operand.vmem [shape: bf16[2,8,96], index: 0, kind: input, shape index: {}]   ;;  %s637_s1 = inlined_call_operand.vmem [shape: f32[2,1,8], index: 1, kind: input, shape index: {}]   ;;  %s638_s2 = inlined_call_operand.vmem [shape: bf16[2,8,32], index: 2, kind: output, shape index: {}]  }
   0x1 LB: > { %s472_s10 = sadd.s32 4294967295, %s534_s9   ;;  %p476_p0 = scmp.ge.s32.totalorder %s534_s9, 1  ;;  %s534_s9 = sphi %s565_s9, %s12_s9  }
   0x2   : > { %p119_p1 = scmp.lt.s32.totalorder %s534_s9, 3 }
   0x4   : > { %p120_p2 = pnand %p476_p0, %p119_p1 }
   0x5   : > { %p142_p3 = scmp.lt.s32.totalorder (!%p120_p2), %s472_s10, 1  ;;  %s536_s18 = smov (!%p120_p2), 96  }
   0x6   : > { %123 = sbr.rel (%p120_p2) target bundleno = 1197 (0x4ad), region = 28  ;;  %s537_s19 = smov (!%p120_p2), 88  }
   0x7   : > { %s538_s20 = smov (!%p120_p2), 120   ;;  %s539_s21 = smov (!%p120_p2), 64  }
   0x8   : > { %s540_s22 = smov (!%p120_p2), 80   ;;  %s541_s23 = smov (!%p120_p2), 72  }
   0x9   : > { %s542_s24 = smov (!%p120_p2), 112   ;;  %s543_s25 = smov (!%p120_p2), 104  }
   0xa   : > { %s544_s28 = smov (!%p120_p2), 56   ;;  %s545_s29 = smov (!%p120_p2), 40  }
   0xb   : > { %s640_s10 = smov (!%p142_p3, %s472_s10), 1  ;;  %vm167_vm0 = vcmask 64512   ;;  %vm204_vm1 = vcmask 1043456   ;;  %s546_s30 = smov 48   ;;  %vm403_vm2 = vcmask 130048   ;;  %vm405_vm3 = vcmask 195584  }
   0xc   : > { %s477_s11 = sshll.u32 %s640_s10, 2  ;;  %s148_s17 = scalar_lea.vmem %s637_s1, %s640_s10  ;;  %vm408_vm4 = vcmask 257024  }
   0xd   : > { %s145_s14 = scalar_lea.vmem %s636_s0, %s477_s11  ;;  %v511_v11 = vld [vmem:[%s148_s17] ss:$0 sm:$0xff]  ;;  %s547_s3 = smov 8  }
   0xe   : > { %v154_v0 = vld [vmem:[%s145_s14] sm:$0xf]  ;;  %s548_s4 = smov 16   ;;  %s549_s5 = smov 24  }
   0xf   : > { %v163_v1 = vunpack.c.l.b16 %v154_v0  ;;  %v156_v3 = vunpack.c.l.bf16 %v154_v0  ;;  %s152_s8 = scalar_lea.vmem %s638_s2, %s477_s11 }
  0x11   : > { %v585_v2 = vpack.c.b16 %v163_v1, %v163_v1  ;;  %v157_v6 = vmul.f32 0.35355338, %v156_v3 }
  0x13   : > { %165 = vrot.lane.b32.xlu0 %v585_v2, %s536_s18  ;;  %224 = vrot.lane.b32.xlu1 %v585_v2, %s537_s19  ;;  %v158_v7 = vpack.c.bf16 %v157_v6, %v157_v6 }
  0x15   : > { %222 = vrot.lane.b32.xlu2 %v158_v7, %s538_s20 }
  0x1d   : > { %199 = vrot.lane.b32.xlu2 %v585_v2, %s539_s21 }
  0x25   : > { %280 = vrot.lane.b32.xlu2 %v585_v2, %s540_s22 }
  0x2d   : > { %336 = vrot.lane.b32.xlu2 %v585_v2, %s541_s23 }
  0x35   : > { %278 = vrot.lane.b32.xlu2 %v158_v7, %s542_s24 }
  0x3d   : > { %334 = vrot.lane.b32.xlu2 %v158_v7, %s543_s25 }
  0x6f   : > { %v223_v10 = vpop.permute.xlu2 %222 }
  0x77   : > { %v200_v16 = vpop.permute.xlu2 %199 }
  0x78   : > { %v206_v21 = vsel %vm204_vm1, %v200_v16, 0 }
  0x79   : > { %215 = vmatpush.bf16.msra.mxu1 %v206_v21 }
  0x7f   : > { %v281_v17 = vpop.permute.xlu2 %280 }
  0x80   : > { %v286_v19 = vsel %vm167_vm0, %v281_v17, 0 }
  0x81   : > { %295 = vmatpush.bf16.xpose.msrb.mxu1 %v286_v19 }
  0x85   : > { %v166_v4 = vpop.permute.xlu0 %165  ;;  %v225_v8 = vpop.permute.xlu1 %224 }
  0x86   : > { %v172_v5 = vsel %vm167_vm0, %v166_v4, 0  ;;  %v230_v9 = vsel %vm167_vm0, %v225_v8, 0 }
  0x87   : > { %181 = vmatpush.bf16.xpose.msra.mxu0 %v172_v5  ;;  %239 = vmatpush.bf16.xpose.msra.mxu2 %v230_v9  ;;  %v337_v18 = vpop.permute.xlu2 %336 }
  0x88   : > { %v342_v20 = vsel %vm167_vm0, %v337_v18, 0 }
  0x8e   : > { %479 = vmatmul.msk.bf16.vlgmr.msra.gmra.mxu0 %vm167_vm0, %v158_v7  ;;  %481 = vmatmul.msk.bf16.vlgmr.msra.gmra.mxu2 %vm167_vm0, %v223_v10 }
  0x8f   : > { %351 = vmatpush.bf16.xpose.msrb.mxu0 %v342_v20  ;;  %v279_v22 = vpop.permute.xlu2 %278 }
  0x97   : > { %v335_v23 = vpop.permute.xlu2 %334 }
  0x9e   : > { %485 = vmatmul.msk.bf16.vlgmr.msrb.gmra.mxu0 %vm167_vm0, %v335_v23 }
 0x10b   : > { %v183_v12 = vpop.f32.mrf.mxu0 }
 0x10c   : > { %v184_v13 = vadd.f32 %v511_v11, %v183_v12 }
 0x10e   : > { %v187_v14 = vsel %vm167_vm0, %v184_v13, -inf }
 0x10f   : > { %188 = vmax.xlane.f32.xlu0 %v187_v14 }
 0x111   : > { %v241_v24 = vpop.f32.mrf.mxu2 }
 0x112   : > { %v242_v25 = vadd.f32 %v511_v11, %v241_v24 }
 0x113   : > { %v185_v15 = vpop.f32.mrf.mxu0 }
 0x114   : > { %v245_v27 = vsel %vm167_vm0, %v242_v25, -inf }
 0x115   : > { %246 = vmax.xlane.f32.xlu2 %v245_v27 }
 0x119   : > { %v243_v30 = vpop.f32.mrf.mxu2 }
 0x11b   : > { %v353_v33 = vpop.f32.mrf.mxu0 }
 0x11c   : > { %v354_v34 = vadd.f32 %v511_v11, %v353_v33 }
 0x11e   : > { %v357_v35 = vsel %vm167_vm0, %v354_v34, -inf }
 0x123   : > { %v355_v37 = vpop.f32.mrf.mxu0 }
 0x182   : > { %v189_v26 = vpop.xlane.xlu0 %188 }
 0x183   : > { %v190_v28 = vsub.f32 %v184_v13, %v189_v26 }
 0x185   : > { %v191_v29 = vmul.f32 1.442695, %v190_v28 }
 0x187   : > { %512 = vpow2.f32 %v191_v29 }
 0x188   : > { %v247_v42 = vpop.xlane.xlu2 %246 }
 0x189   : > { %v248_v44 = vsub.f32 %v242_v25, %v247_v42 }
 0x18b   : > { %v249_v45 = vmul.f32 1.442695, %v248_v44 }
 0x18d   : > { %v513_v31 = vpop.eup %512 }
 0x18e   : > { %v193_v32 = vsel %vm167_vm0, %v513_v31, 0.0 }
 0x18f   : > { %194 = vadd.xlane.f32.xlu1 %v193_v32 }
 0x197   : > { %358 = vmax.xlane.f32.xlu1 %v357_v35 }
 0x1b0   : > { %257 = vrot.lane.b32.xlu1 %v585_v2, %s544_s28 }
 0x1b8   : > { %369 = vrot.lane.b32.xlu1 %v585_v2, %s545_s29 }
 0x202   : > { %v195_v36 = vpop.xlane.xlu1 %194 }
 0x203   : > { %514 = vrcp.f32 %v195_v36 }
 0x204   : > { %516 = vpow2.f32 %v249_v45 }
 0x209   : > { %v515_v38 = vpop.eup %514 }
 0x20a   : > { %v197_v39 = vmul.f32 %v515_v38, %v513_v31  ;;  %v359_v46 = vpop.xlane.xlu1 %358  ;;  %v517_v52 = vpop.eup %516 }
 0x20b   : > { %v360_v49 = vsub.f32 %v354_v34, %v359_v46  ;;  %v251_v54 = vsel %vm167_vm0, %v517_v52, 0.0 }
 0x20c   : > { %v198_v40 = vpack.c.bf16 %v197_v39, %v197_v39 }
 0x20d   : > { %v361_v51 = vmul.f32 1.442695, %v360_v49 }
 0x20e   : > { %480 = vmatmul.msk.bf16.vlgmr.msra.gmra.mxu1 %vm167_vm0, %v198_v40 }
 0x20f   : > { %518 = vpow2.f32 %v361_v51 }
 0x215   : > { %v519_v55 = vpop.eup %518 }
 0x216   : > { %v363_v56 = vsel %vm167_vm0, %v519_v55, 0.0 }
 0x21e   : > { %483 = vmatmul.msk.bf16.vlgmr.msrb.gmra.mxu1 %vm167_vm0, %v279_v22 }
 0x222   : > { %v258_v57 = vpop.permute.xlu1 %257 }
 0x223   : > { %v263_v58 = vsel %vm204_vm1, %v258_v57, 0 }
 0x224   : > { %272 = vmatpush.bf16.msra.mxu3 %v263_v58 }
 0x22a   : > { %v370_v59 = vpop.permute.xlu1 %369 }
 0x22b   : > { %v375_v60 = vsel %vm204_vm1, %v370_v59, 0 }
 0x22c   : > { %384 = vmatpush.bf16.msrb.mxu2 %v375_v60 }
 0x28b   : > { %v613_v41 = vpop.f32.mrf.mxu1 }
 0x293   : > { %v219_v43 = vpop.f32.mrf.mxu1 }
 0x29b   : > { %v297_v47 = vpop.f32.mrf.mxu1 }
 0x29c   : > { %v298_v48 = vadd.f32 %v511_v11, %v297_v47 }
 0x29e   : > { %v301_v50 = vsel %vm167_vm0, %v298_v48, -inf }
 0x29f   : > { %302 = vmax.xlane.f32.xlu0 %v301_v50 }
 0x2a3   : > { %v299_v53 = vpop.f32.mrf.mxu1 }
 0x2a7   : > { %252 = vadd.xlane.f32.xlu0 %v251_v54 }
 0x2af   : > { %364 = vadd.xlane.f32.xlu0 %v363_v56 }
 0x312   : > { %v303_v61 = vpop.xlane.xlu0 %302 }
 0x313   : > { %v304_v62 = vsub.f32 %v298_v48, %v303_v61 }
 0x315   : > { %v305_v63 = vmul.f32 1.442695, %v304_v62 }
 0x317   : > { %520 = vpow2.f32 %v305_v63 }
 0x31a   : > { %v253_v0 = vpop.xlane.xlu0 %252 }
 0x31b   : > { %522 = vrcp.f32 %v253_v0 }
 0x31d   : > { %v521_v1 = vpop.eup %520 }
 0x31e   : > { %v307_v3 = vsel %vm167_vm0, %v521_v1, 0.0 }
 0x31f   : > { %308 = vadd.xlane.f32.xlu0 %v307_v3 }
 0x321   : > { %v523_v4 = vpop.eup %522 }
 0x322   : > { %v365_v5 = vpop.xlane.xlu0 %364  ;;  %v255_v6 = vmul.f32 %v523_v4, %v517_v52 }
 0x323   : > { %524 = vrcp.f32 %v365_v5 }
 0x324   : > { %v256_v7 = vpack.c.bf16 %v255_v6, %v255_v6 }
 0x326   : > { %482 = vmatmul.msk.bf16.vlgmr.msra.gmra.mxu3 %vm167_vm0, %v256_v7 }
 0x329   : > { %v525_v8 = vpop.eup %524 }
 0x32a   : > { %v367_v9 = vmul.f32 %v525_v8, %v519_v55 }
 0x32c   : > { %v368_v10 = vpack.c.bf16 %v367_v9, %v367_v9 }
 0x32e   : > { %486 = vmatmul.msk.bf16.vlgmr.msrb.gmra.mxu2 %vm167_vm0, %v368_v10 }
 0x333   : > { %313 = vrot.lane.b32.xlu0 %v585_v2, %s546_s30 }
 0x392   : > { %v309_v11 = vpop.xlane.xlu0 %308 }
 0x393   : > { %526 = vrcp.f32 %v309_v11 }
 0x399   : > { %v527_v12 = vpop.eup %526 }
 0x39a   : > { %v311_v13 = vmul.f32 %v527_v12, %v521_v1 }
 0x39c   : > { %v312_v16 = vpack.c.bf16 %v311_v13, %v311_v13 }
 0x3a5   : > { %v314_v14 = vpop.permute.xlu0 %313 }
 0x3a6   : > { %v319_v15 = vsel %vm204_vm1, %v314_v14, 0 }
 0x3a7   : > { %328 = vmatpush.bf16.msrb.mxu3 %v319_v15 }
 0x3a9   : > { %v274_v17 = vpop.f32.mrf.mxu3 }
 0x3aa   : > { %484 = vmatmul.msk.bf16.vlgmr.msrb.gmra.mxu3 %vm167_vm0, %v312_v16  ;;  %391 = vrot.lane.b32.xlu2 %v274_v17, %s547_s3 }
 0x3b1   : > { %v276_v18 = vpop.f32.mrf.mxu3  ;;  %v386_v19 = vpop.f32.mrf.mxu2 }
 0x3b9   : > { %v388_v20 = vpop.f32.mrf.mxu2 }
 0x404   : > { %v392_v23 = vpop.permute.xlu2 %391 }
 0x405   : > { %v402_v24 = vsel %vm167_vm0, %v613_v41, %v392_v23 }
 0x42d   : > { %v330_v21 = vpop.f32.mrf.mxu3 }
 0x42e   : > { %395 = vrot.lane.b32.xlu1 %v330_v21, %s548_s4 }
 0x435   : > { %v332_v2 = vpop.f32.mrf.mxu3 }
 0x436   : > { %399 = vrot.lane.b32.xlu1 %v386_v19, %s549_s5 }
 0x4a0   : > { %v396_v22 = vpop.permute.xlu1 %395 }
 0x4a1   : > { %v404_v25 = vsel %vm403_vm2, %v402_v24, %v396_v22 }
 0x4a8   : > { %v400_v26 = vpop.permute.xlu1 %399 }
 0x4a9   : > { %v406_v27 = vsel %vm405_vm3, %v404_v25, %v400_v26 }
 0x4aa   : > { %v407_v28 = vpack.c.bf16 %v406_v27, %v406_v27 }
 0x4ac   : > { %409 = vst.msk [vmem:[%s152_s8] sm:$0xf] %vm408_vm4, %v407_v28 }
 0x4ad PF: > { %s12_s9 = sadd.s32 1, %s534_s9  }
 0x4ae   : > { %p9_p4 = scmp.ge.s32.totalorder %s12_s9, 4  }
 0x4b0   :  { %11 = sbr.rel (!%p9_p4) target bundleno = 1 (0x1), region = 61 }

// kernel: bert_forward.17
= control target key start
LH: loop header
LB: loop body
LE: loop exit
PB: predicated region body
PF: predicated region fallthrough
CT: control target
= control target key end

     0   :  { %vm19_vm0 = vcmask 523264   ;;  %v130_v1 = vmov 0.0   ;;  %vm47_vm1 = vcmask 261120   ;;  %vm101_vm2 = vcmask 519168   ;;  %s173_s1 = inlined_call_operand.vmem [shape: bf16[32,64], index: 1, kind: input, shape index: {}]   ;;  %s174_s2 = inlined_call_operand.vmem [shape: f32[1,64], index: 2, kind: input, shape index: {}]   ;;  %s175_s0 = inlined_call_operand.vmem [shape: bf16[16,32], index: 0, kind: input, shape index: {}]   ;;  %s176_s3 = inlined_call_operand.vmem [shape: bf16[16,64], index: 3, kind: output, shape index: {}]  }
   0x1   :  { %v123_v0 = vld [vmem:[%s173_s1 + $0x8] sm:$0xff]  ;;  %20 = vst.msk [vmem:[#allocation2] sm:$0xff] %vm19_vm0, %v130_v1  ;;  %v122_v2 = vld [vmem:[%s173_s1] sm:$0xff] }
   0x2   :  { %21 = vst.msk [vmem:[#allocation2 + $0x8] sm:$0xff] %vm19_vm0, %v130_v1  ;;  %57 = vmatpush.bf16.msra.mxu0 %v123_v0  ;;  %v121_v3 = vld [vmem:[%s175_s0] sm:$0xff] }
   0x3   :  { %v125_v8 = vld [vmem:[%s174_s2] ss:$0 sm:$0xff] }
   0x6   :  { %58 = vmatpush.bf16.msra.mxu0 %v122_v2 }
   0x8   :  { %v22_v4 = vld [vmem:[#allocation2] sm:$0xff] }
   0x9   :  { %120 = vmatmul.msk.bf16.vlgmr.msra.gmra.mxu0 %vm47_vm1, %v121_v3  ;;  %v23_v7 = vld [vmem:[#allocation2 + $0x8] sm:$0xff] }
  0x86   :  { %v60_v5 = vpop.f32.mrf.mxu0 }
  0x87   :  { %v65_v6 = vadd.f32 %v60_v5, %v22_v4 }
  0x89   :  { %68 = vst.msk [vmem:[#allocation2] sm:$0xff] %vm19_vm0, %v65_v6 }
  0x8e   :  { %v62_v9 = vpop.f32.mrf.mxu0 }
  0x8f   :  { %v66_v10 = vadd.f32 %v62_v9, %v23_v7 }
  0x90   :  { %v73_v11 = vld [vmem:[#allocation2] sm:$0xff] }
  0x91   :  { %v79_v12 = vadd.f32 %v125_v8, %v73_v11  ;;  %69 = vst.msk [vmem:[#allocation2 + $0x8] sm:$0xff] %vm19_vm0, %v66_v10 }
  0x93   :  { %v81_v13 = vmul.f32 %v79_v12, %v79_v12 }
  0x95   :  { %v83_v14 = vmul.f32 %v81_v13, %v79_v12 }
  0x97   :  { %v85_v15 = vmul.f32 0.044715, %v83_v14 }
  0x98   :  { %v74_v16 = vld [vmem:[#allocation2 + $0x8] sm:$0xff] }
  0x99   :  { %v87_v17 = vadd.f32 %v85_v15, %v79_v12  ;;  %v80_v18 = vadd.f32 %v125_v8, %v74_v16 }
  0x9b   :  { %v89_v19 = vmul.f32 0.7978846, %v87_v17  ;;  %v82_v20 = vmul.f32 %v80_v18, %v80_v18 }
  0x9d   :  { %126 = vtanh.f32 %v89_v19  ;;  %v84_v21 = vmul.f32 %v82_v20, %v80_v18 }
  0x9f   :  { %v86_v22 = vmul.f32 0.044715, %v84_v21 }
  0xa1   :  { %v88_v23 = vadd.f32 %v86_v22, %v80_v18 }
  0xa3   :  { %v127_v24 = vpop.eup %126  ;;  %v90_v25 = vmul.f32 0.7978846, %v88_v23 }
  0xa4   :  { %v93_v26 = vadd.f32 1.0, %v127_v24 }
  0xa5   :  { %128 = vtanh.f32 %v90_v25 }
  0xa6   :  { %v95_v27 = vmul.f32 0.5, %v93_v26 }
  0xa8   :  { %v97_v28 = vmul.f32 %v95_v27, %v79_v12 }
  0xaa   :  { %v99_v29 = vpack.c.bf16 %v97_v28, %v97_v28 }
  0xab   :  { %v129_v30 = vpop.eup %128 }
  0xac   :  { %102 = vst.msk [vmem:[%s176_s3] sm:$0xf] %vm101_vm2, %v99_v29  ;;  %v94_v31 = vadd.f32 1.0, %v129_v30 }
  0xae   :  { %v96_v32 = vmul.f32 0.5, %v94_v31 }
  0xb0   :  { %v98_v33 = vmul.f32 %v96_v32, %v80_v18 }
  0xb2   :  { %v100_v34 = vpack.c.bf16 %v98_v33, %v98_v33 }
  0xb4   :  { %103 = vst.msk [vmem:[%s176_s3 + $0x4] sm:$0xf] %vm101_vm2, %v100_v34 }

// kernel: bert_forward.24
= control target key start
LH: loop header
LB: loop body
LE: loop exit
PB: predicated region body
PF: predicated region fallthrough
CT: control target
= control target key end

     0   :  { %vm25_vm0 = vcmask 261120   ;;  %v207_v1 = vmov 0.0   ;;  %v208_v35 = vmov 32.0   ;;  %vm169_vm6 = vcmask 257024   ;;  %s272_s1 = inlined_call_operand.vmem [shape: bf16[32,32], index: 1, kind: input, shape index: {}]   ;;  %s273_s0 = inlined_call_operand.vmem [shape: bf16[16,32], index: 0, kind: input, shape index: {}]   ;;  %s274_s2 = inlined_call_operand.vmem [shape: f32[1,32], index: 2, kind: input, shape index: {}]   ;;  %s275_s3 = inlined_call_operand.vmem [shape: f32[1,32], index: 3, kind: input, shape index: {}]   ;;  %s276_s4 = inlined_call_operand.vmem [shape: f32[1,32], index: 4, kind: input, shape index: {}]   ;;  %s277_s5 = inlined_call_operand.vmem [shape: bf16[16,32], index: 5, kind: output, shape index: {}]  }
   0x1   :  { %v191_v0 = vld [vmem:[%s272_s1 + $0x8] sm:$0xff]  ;;  %26 = vst.msk [vmem:[#allocation2] sm:$0xff] %vm25_vm0, %v207_v1  ;;  %v190_v2 = vld [vmem:[%s272_s1] sm:$0xff] }
   0x2   :  { %27 = vst.msk [vmem:[#allocation2 + $0x8] sm:$0xff] %vm25_vm0, %v207_v1  ;;  %63 = vmatpush.bf16.msra.mxu0 %v191_v0  ;;  %v189_v3 = vld [vmem:[%s273_s0] sm:$0xff] }
   0x3   :  { %v194_v8 = vld [vmem:[%s274_s2] ss:$0 sm:$0xff] }
   0x6   :  { %64 = vmatpush.bf16.msra.mxu0 %v190_v2  ;;  %v195_v2 = vld [vmem:[%s275_s3] ss:$0 sm:$0xff] }
   0x8   :  { %v28_v4 = vld [vmem:[#allocation2] sm:$0xff] }
   0x9   :  { %188 = vmatmul.msk.bf16.vlgmr.msra.gmra.mxu0 %vm25_vm0, %v189_v3  ;;  %v29_v7 = vld [vmem:[#allocation2 + $0x8] sm:$0xff] }
  0x86   :  { %v66_v5 = vpop.f32.mrf.mxu0 }
  0x87   :  { %v71_v6 = vadd.f32 %v66_v5, %v28_v4  ;;  %v196_v5 = vld [vmem:[%s276_s4] ss:$0 sm:$0xff] }
  0x89   :  { %73 = vst.msk [vmem:[#allocation2] sm:$0xff] %vm25_vm0, %v71_v6 }
  0x8e   :  { %v68_v9 = vpop.f32.mrf.mxu0 }
  0x8f   :  { %v72_v10 = vadd.f32 %v68_v9, %v29_v7 }
  0x90   :  { %v78_v11 = vld [vmem:[#allocation2] sm:$0xff] }
  0x91   :  { %74 = vst.msk [vmem:[#allocation2 + $0x8] sm:$0xff] %vm25_vm0, %v72_v10  ;;  %v84_v12 = vadd.f32 %v194_v8, %v78_v11 }
  0x93   :  { %v86_v13 = vmul.f32 %v84_v12, %v84_v12 }
  0x95   :  { %v88_v14 = vmul.f32 %v86_v13, %v84_v12 }
  0x97   :  { %v90_v15 = vmul.f32 0.044715, %v88_v14 }
  0x98   :  { %v79_v16 = vld [vmem:[#allocation2 + $0x8] sm:$0xff] }
  0x99   :  { %v92_v17 = vadd.f32 %v90_v15, %v84_v12  ;;  %v85_v18 = vadd.f32 %v194_v8, %v79_v16 }
  0x9b   :  { %v94_v19 = vmul.f32 0.7978846, %v92_v17  ;;  %v87_v20 = vmul.f32 %v85_v18, %v85_v18 }
  0x9d   :  { %197 = vtanh.f32 %v94_v19  ;;  %v89_v21 = vmul.f32 %v87_v20, %v85_v18 }
  0x9f   :  { %v91_v22 = vmul.f32 0.044715, %v89_v21 }
  0xa1   :  { %v93_v23 = vadd.f32 %v91_v22, %v85_v18 }
  0xa3   :  { %v198_v24 = vpop.eup %197  ;;  %v95_v25 = vmul.f32 0.7978846, %v93_v23 }
  0xa4   :  { %v98_v26 = vadd.f32 1.0, %v198_v24 }
  0xa5   :  { %199 = vtanh.f32 %v95_v25 }
  0xa6   :  { %v100_v27 = vmul.f32 0.5, %v98_v26  ;;  %201 = vrcp.f32 %v208_v35 }
  0xa8   :  { %v102_v28 = vmul.f32 %v100_v27, %v84_v12 }
  0xaa   :  { %v104_v29 = vsel %vm25_vm0, %v102_v28, 0.0 }
  0xab   :  { %v200_v30 = vpop.eup %199  ;;  %105 = vadd.xlane.f32.xlu0 %v104_v29 }
  0xac   :  { %v99_v31 = vadd.f32 1.0, %v200_v30  ;;  %v202_v36 = vpop.eup %201 }
  0xad   :  { %v111_v37 = vmul.f32 32.0, %v202_v36  ;;  %vm115_vm1 = vweird.f32 %v202_v36 }
  0xae   :  { %v101_v32 = vmul.f32 0.5, %v99_v31 }
  0xaf   :  { %v112_v38 = vsub.f32 1.0, %v111_v37 }
  0xb0   :  { %v103_v33 = vmul.f32 %v101_v32, %v85_v18 }
  0xb1   :  { %v113_v39 = vmul.f32 %v202_v36, %v112_v38 }
  0xb2   :  { %v107_v34 = vsel %vm25_vm0, %v103_v33, 0.0 }
  0xb3   :  { %108 = vadd.xlane.f32.xlu0 %v107_v34  ;;  %v114_v40 = vadd.f32 %v202_v36, %v113_v39 }
  0xb5   :  { %v116_v41 = vsel %vm115_vm1, %v202_v36, %v114_v40 }
 0x11e   :  { %v106_v42 = vpop.xlane.xlu0 %105 }
 0x11f   :  { %v117_v43 = vmul.f32 %v116_v41, %v106_v42 }
 0x121   :  { %v119_v44 = vsub.f32 %v102_v28, %v117_v43 }
 0x123   :  { %v121_v45 = vmul.f32 %v119_v44, %v119_v44 }
 0x125   :  { %v123_v46 = vsel %vm25_vm0, %v121_v45, 0.0 }
 0x126   :  { %124 = vadd.xlane.f32.xlu1 %v123_v46  ;;  %v109_v47 = vpop.xlane.xlu0 %108 }
 0x127   :  { %v118_v48 = vmul.f32 %v116_v41, %v109_v47 }
 0x129   :  { %v120_v49 = vsub.f32 %v103_v33, %v118_v48 }
 0x12b   :  { %v122_v50 = vmul.f32 %v120_v49, %v120_v49 }
 0x12d   :  { %v126_v51 = vsel %vm25_vm0, %v122_v50, 0.0 }
 0x12e   :  { %127 = vadd.xlane.f32.xlu1 %v126_v51 }
 0x199   :  { %v125_v52 = vpop.xlane.xlu1 %124 }
 0x19a   :  { %v129_v53 = vmul.f32 %v125_v52, %v116_v41 }
 0x19c   :  { %v131_v54 = vadd.f32 1e-12, %v129_v53 }
 0x19e   :  { %203 = vrsqrt.f32 %v131_v54  ;;  %vm139_vm3 = vweird.f32 %v131_v54 }
 0x1a1   :  { %v128_v55 = vpop.xlane.xlu1 %127 }
 0x1a2   :  { %v130_v56 = vmul.f32 %v128_v55, %v116_v41 }
 0x1a4   :  { %v204_v57 = vpop.eup %203  ;;  %v132_v58 = vadd.f32 1e-12, %v130_v56 }
 0x1a5   :  { %v134_v59 = vmul.f32 %v204_v57, %v131_v54  ;;  %vm140_vm2 = vweird.f32 %v204_v57 }
 0x1a6   :  { %205 = vrsqrt.f32 %v132_v58  ;;  %vm141_vm4 = vmor %vm139_vm3, %vm140_vm2  ;;  %vm149_vm7 = vweird.f32 %v132_v58 }
 0x1a7   :  { %v135_v60 = vmul.f32 %v204_v57, %v134_v59 }
 0x1a9   :  { %v136_v61 = vmul.f32 0.5, %v135_v60 }
 0x1ab   :  { %v137_v62 = vsub.f32 1.5, %v136_v61 }
 0x1ac   :  { %v206_v63 = vpop.eup %205 }
 0x1ad   :  { %v138_v0 = vmul.f32 %v204_v57, %v137_v62  ;;  %v144_v1 = vmul.f32 %v206_v63, %v132_v58  ;;  %vm150_vm5 = vweird.f32 %v206_v63 }
 0x1ae   :  { %vm151_vm8 = vmor %vm149_vm7, %vm150_vm5 }
 0x1af   :  { %v142_v3 = vsel %vm141_vm4, %v204_v57, %v138_v0  ;;  %v145_v4 = vmul.f32 %v206_v63, %v144_v1 }
 0x1b0   :  { %v153_v6 = vmul.f32 %v142_v3, %v119_v44 }
 0x1b1   :  { %v146_v7 = vmul.f32 0.5, %v145_v4 }
 0x1b2   :  { %v159_v8 = vmul.f32 %v195_v2, %v153_v6 }
 0x1b3   :  { %v147_v9 = vsub.f32 1.5, %v146_v7 }
 0x1b4   :  { %v165_v10 = vadd.f32 %v196_v5, %v159_v8 }
 0x1b5   :  { %v148_v11 = vmul.f32 %v206_v63, %v147_v9 }
 0x1b6   :  { %v167_v12 = vpack.c.bf16 %v165_v10, %v165_v10 }
 0x1b7   :  { %v152_v13 = vsel %vm151_vm8, %v206_v63, %v148_v11 }
 0x1b8   :  { %170 = vst.msk [vmem:[%s277_s5] sm:$0xf] %vm169_vm6, %v167_v12  ;;  %v154_v14 = vmul.f32 %v152_v13, %v120_v49 }
 0x1ba   :  { %v160_v15 = vmul.f32 %v195_v2, %v154_v14 }
 0x1bc   :  { %v166_v16 = vadd.f32 %v196_v5, %v160_v15 }
 0x1be   :  { %v168_v17 = vpack.c.bf16 %v166_v16, %v166_v16 }
 0x1c0   :  { %171 = vst.msk [vmem:[%s277_s5 + $0x4] sm:$0xf] %vm169_vm6, %v168_v17 }

// kernel: bert_forward.18
= control target key start
LH: loop header
LB: loop body
LE: loop exit
PB: predicated region body
PF: predicated region fallthrough
CT: control target
= control target key end

     0   :  { %vm28_vm0 = vcmask 261120   ;;  %v225_v1 = vmov 0.0   ;;  %vm72_vm1 = vcmask 523264   ;;  %v226_v24 = vmov 32.0   ;;  %s303_s1 = inlined_call_operand.vmem [shape: bf16[64,32], index: 1, kind: input, shape index: {}]   ;;  %s304_s0 = inlined_call_operand.vmem [shape: bf16[16,64], index: 0, kind: input, shape index: {}]   ;;  %s305_s2 = inlined_call_operand.vmem [shape: f32[1,32], index: 2, kind: input, shape index: {}]   ;;  %s306_s3 = inlined_call_operand.vmem [shape: bf16[16,32], index: 3, kind: input, shape index: {}]   ;;  %s307_s4 = inlined_call_operand.vmem [shape: f32[1,32], index: 4, kind: input, shape index: {}]   ;;  %s308_s5 = inlined_call_operand.vmem [shape: f32[1,32], index: 5, kind: input, shape index: {}]   ;;  %s309_s6 = inlined_call_operand.vmem [shape: bf16[16,32], index: 6, kind: output, shape index: {}]  }
   0x1   :  { %v209_v0 = vld [vmem:[%s303_s1 + $0x18] sm:$0xff]  ;;  %29 = vst.msk [vmem:[#allocation2] sm:$0xff] %vm28_vm0, %v225_v1  ;;  %v208_v2 = vld [vmem:[%s303_s1 + $0x10] sm:$0xff]  ;;  %v207_v3 = vld [vmem:[%s303_s1 + $0x8] sm:$0xff]  ;;  %219 = vrcp.f32 %v226_v24  ;;  %vm177_vm7 = vcmask 257024  }
   0x2   :  { %30 = vst.msk [vmem:[#allocation2 + $0x8] sm:$0xff] %vm28_vm0, %v225_v1  ;;  %80 = vmatpush.bf16.msra.mxu0 %v209_v0  ;;  %v206_v4 = vld [vmem:[%s303_s1] sm:$0xff] }
   0x3   :  { %v205_v5 = vld [vmem:[%s304_s0] sm:$0xff] }
   0x4   :  { %v211_v10 = vld [vmem:[%s306_s3] sm:$0xff]  }
   0x5   :  { %v216_v11 = vld [vmem:[%s305_s2] ss:$0 sm:$0xff]  ;;  %v212_v14 = vunpack.c.l.bf16 %v211_v10  ;;  %v213_v19 = vunpack.c.h.bf16 %v211_v10 }
   0x6   :  { %81 = vmatpush.bf16.msra.mxu0 %v208_v2  ;;  %v217_v55 = vld [vmem:[%s307_s4] ss:$0 sm:$0xff] }
   0x7   :  { %v220_v25 = vpop.eup %219  ;;  %v218_v58 = vld [vmem:[%s308_s5] ss:$0 sm:$0xff] }
   0x8   :  { %v31_v6 = vld [vmem:[#allocation2] sm:$0xff]  ;;  %v119_v26 = vmul.f32 32.0, %v220_v25  ;;  %vm123_vm2 = vweird.f32 %v220_v25 }
   0x9   :  { %v32_v9 = vld [vmem:[#allocation2 + $0x8] sm:$0xff] }
   0xa   :  { %82 = vmatpush.bf16.msra.mxu0 %v207_v3  ;;  %v120_v27 = vsub.f32 1.0, %v119_v26 }
   0xc   :  { %v121_v28 = vmul.f32 %v220_v25, %v120_v27 }
   0xe   :  { %83 = vmatpush.bf16.msra.mxu0 %v206_v4  ;;  %v122_v29 = vadd.f32 %v220_v25, %v121_v28 }
  0x10   :  { %v124_v30 = vsel %vm123_vm2, %v220_v25, %v122_v29 }
  0x11   :  { %204 = vmatmul.msk.bf16.vlgmr.msra.gmra.mxu0 %vm72_vm1, %v205_v5 }
  0x8e   :  { %v85_v7 = vpop.f32.mrf.mxu0 }
  0x8f   :  { %v90_v8 = vadd.f32 %v85_v7, %v31_v6 }
  0x91   :  { %93 = vst.msk [vmem:[#allocation2] sm:$0xff] %vm28_vm0, %v90_v8 }
  0x96   :  { %v87_v12 = vpop.f32.mrf.mxu0 }
  0x97   :  { %v91_v13 = vadd.f32 %v87_v12, %v32_v9 }
  0x98   :  { %v98_v15 = vld [vmem:[#allocation2] sm:$0xff] }
  0x99   :  { %94 = vst.msk [vmem:[#allocation2 + $0x8] sm:$0xff] %vm28_vm0, %v91_v13  ;;  %v104_v16 = vadd.f32 %v216_v11, %v98_v15 }
  0x9b   :  { %v110_v17 = vadd.f32 %v212_v14, %v104_v16 }
  0x9d   :  { %v112_v18 = vsel %vm28_vm0, %v110_v17, 0.0 }
  0x9e   :  { %113 = vadd.xlane.f32.xlu0 %v112_v18 }
  0xa0   :  { %v99_v20 = vld [vmem:[#allocation2 + $0x8] sm:$0xff] }
  0xa1   :  { %v105_v21 = vadd.f32 %v216_v11, %v99_v20 }
  0xa3   :  { %v111_v22 = vadd.f32 %v213_v19, %v105_v21 }
  0xa5   :  { %v115_v23 = vsel %vm28_vm0, %v111_v22, 0.0 }
  0xa6   :  { %116 = vadd.xlane.f32.xlu0 %v115_v23 }
 0x111   :  { %v114_v31 = vpop.xlane.xlu0 %113 }
 0x112   :  { %v125_v32 = vmul.f32 %v124_v30, %v114_v31 }
 0x114   :  { %v127_v33 = vsub.f32 %v110_v17, %v125_v32 }
 0x116   :  { %v129_v34 = vmul.f32 %v127_v33, %v127_v33 }
 0x118   :  { %v131_v35 = vsel %vm28_vm0, %v129_v34, 0.0 }
 0x119   :  { %132 = vadd.xlane.f32.xlu1 %v131_v35  ;;  %v117_v36 = vpop.xlane.xlu0 %116 }
 0x11a   :  { %v126_v37 = vmul.f32 %v124_v30, %v117_v36 }
 0x11c   :  { %v128_v38 = vsub.f32 %v111_v22, %v126_v37 }
 0x11e   :  { %v130_v39 = vmul.f32 %v128_v38, %v128_v38 }
 0x120   :  { %v134_v40 = vsel %vm28_vm0, %v130_v39, 0.0 }
 0x121   :  { %135 = vadd.xlane.f32.xlu1 %v134_v40 }
 0x18c   :  { %v133_v41 = vpop.xlane.xlu1 %132 }
 0x18d   :  { %v137_v42 = vmul.f32 %v133_v41, %v124_v30 }
 0x18f   :  { %v139_v43 = vadd.f32 1e-12, %v137_v42 }
 0x191   :  { %221 = vrsqrt.f32 %v139_v43  ;;  %vm147_vm4 = vweird.f32 %v139_v43 }
 0x194   :  { %v136_v44 = vpop.xlane.xlu1 %135 }
 0x195   :  { %v138_v45 = vmul.f32 %v136_v44, %v124_v30 }
 0x197   :  { %v222_v46 = vpop.eup %221  ;;  %v140_v47 = vadd.f32 1e-12, %v138_v45 }
 0x198   :  { %v142_v48 = vmul.f32 %v222_v46, %v139_v43  ;;  %vm148_vm3 = vweird.f32 %v222_v46 }
 0x199   :  { %223 = vrsqrt.f32 %v140_v47  ;;  %vm149_vm5 = vmor %vm147_vm4, %vm148_vm3  ;;  %vm157_vm8 = vweird.f32 %v140_v47 }
 0x19a   :  { %v143_v49 = vmul.f32 %v222_v46, %v142_v48 }
 0x19c   :  { %v144_v50 = vmul.f32 0.5, %v143_v49 }
 0x19e   :  { %v145_v51 = vsub.f32 1.5, %v144_v50 }
 0x19f   :  { %v224_v52 = vpop.eup %223 }
 0x1a0   :  { %v146_v53 = vmul.f32 %v222_v46, %v145_v51  ;;  %v152_v54 = vmul.f32 %v224_v52, %v140_v47  ;;  %vm158_vm6 = vweird.f32 %v224_v52 }
 0x1a1   :  { %vm159_vm9 = vmor %vm157_vm8, %vm158_vm6 }
 0x1a2   :  { %v150_v56 = vsel %vm149_vm5, %v222_v46, %v146_v53  ;;  %v153_v57 = vmul.f32 %v224_v52, %v152_v54 }
 0x1a3   :  { %v161_v59 = vmul.f32 %v150_v56, %v127_v33 }
 0x1a4   :  { %v154_v60 = vmul.f32 0.5, %v153_v57 }
 0x1a5   :  { %v167_v61 = vmul.f32 %v217_v55, %v161_v59 }
 0x1a6   :  { %v155_v62 = vsub.f32 1.5, %v154_v60 }
 0x1a7   :  { %v173_v63 = vadd.f32 %v218_v58, %v167_v61 }
 0x1a8   :  { %v156_v0 = vmul.f32 %v224_v52, %v155_v62 }
 0x1a9   :  { %v175_v1 = vpack.c.bf16 %v173_v63, %v173_v63 }
 0x1aa   :  { %v160_v2 = vsel %vm159_vm9, %v224_v52, %v156_v0 }
 0x1ab   :  { %178 = vst.msk [vmem:[%s309_s6] sm:$0xf] %vm177_vm7, %v175_v1  ;;  %v162_v3 = vmul.f32 %v160_v2, %v128_v38 }
 0x1ad   :  { %v168_v4 = vmul.f32 %v217_v55, %v162_v3 }
 0x1af   :  { %v174_v5 = vadd.f32 %v218_v58, %v168_v4 }
 0x1b1   :  { %v176_v6 = vpack.c.bf16 %v174_v5, %v174_v5 }
 0x1b3   :  { %179 = vst.msk [vmem:[%s309_s6 + $0x4] sm:$0xf] %vm177_vm7, %v176_v6 }

// kernel: bert_forward.25
= control target key start
LH: loop header
LB: loop body
LE: loop exit
PB: predicated region body
PF: predicated region fallthrough
CT: control target
= control target key end

     0   :  { %s250_s0 = inlined_call_operand.vmem [shape: bf16[16,32], index: 0, kind: input, shape index: {}]   ;;  %s251_s1 = inlined_call_operand.vmem [shape: bf16[32,256], index: 1, kind: input, shape index: {}]   ;;  %s252_s2 = inlined_call_operand.vmem [shape: f32[1,256], index: 2, kind: input, shape index: {}]   ;;  %s253_s3 = inlined_call_operand.hbm [shape: f32[16,256], index: 3, kind: output, shape index: {}]  }
   0x1   :  { %v152_v0 = vld [vmem:[%s251_s1 + $0x10] sm:$0xf]  ;;  %v164_v1 = vld [vmem:[%s251_s1 + $0x14] sm:$0xf0]  ;;  %v163_v2 = vld [vmem:[%s251_s1 + $0x14] sm:$0xf] }
   0x2   :  { %v153_v3 = vor.u32 %v164_v1, %v152_v0  ;;  %v154_v4 = vld [vmem:[%s251_s1 + $0x18] sm:$0xf0]  ;;  %v144_v5 = vld [vmem:[%s251_s1] sm:$0xf]  ;;  %v162_v6 = vld [vmem:[%s251_s1 + $0x4] sm:$0xf0] }
   0x3   :  { %v157_v7 = vor.u32 %v163_v2, %v154_v4  ;;  %v161_v8 = vld [vmem:[%s251_s1 + $0x4] sm:$0xf]  ;;  %v146_v9 = vld [vmem:[%s251_s1 + $0x8] sm:$0xf0]  ;;  %v145_v10 = vor.u32 %v162_v6, %v144_v5 }
   0x4   :  { %69 = vmatpush.bf16.msra.mxu0 %v153_v3 }
   0x5   :  { %8 = vsyncpa [#allocation4], 0  ;;  %83 = vmatpush.bf16.msra.mxu1 %v157_v7  ;;  %v149_v11 = vor.u32 %v161_v8, %v146_v9  ;;  %v160_v12 = vld [vmem:[%s250_s0] sm:$0xff]  ;;  %vm59_vm0 = vcmask 261120   ;;  %s194_s1 = smov [#allocation3]   ;;  %s126_s7 = sshll.u32 %s253_s3, 4  ;;  %s127_s7 = int_to_ptr.hbm [resolvable:$true] %s126_s7 }
   0x6   :  { %v106_v13 = vld [vmem:[%s252_s2] sm:$0x3]  ;;  %s124_s5 = sshll.u32 %s194_s1, 4  ;;  %s195_s2 = smov 256   ;;  %s125_s5 = int_to_ptr.vmem [resolvable:$true] %s124_s5 }
   0x7   :  { %v108_v14 = vperm.slane %v106_v13, 0  ;;  %v109_v15 = vperm.slane %v106_v13, 1  ;;  %s196_s8 = smov 16  }
   0x8   :  { %70 = vmatpush.bf16.msra.mxu0 %v145_v10 }
   0x9   :  { %84 = vmatpush.bf16.msra.mxu1 %v149_v11 }
   0xb   :  { %158 = vmatmul.msk.bf16.vlgmr.msra.gmra.mxu0 %vm59_vm0, %v160_v12 }
   0xc   :  { %159 = vmatmul.msk.bf16.vlgmr.msra.gmra.mxu1 %vm59_vm0, %v160_v12 }
  0x88   :  { %v72_v16 = vpop.f32.mrf.mxu0 }
  0x89   :  { %v112_v17 = vadd.f32 %v108_v14, %v72_v16  ;;  %v86_v18 = vpop.f32.mrf.mxu1 }
  0x8a   :  { %v113_v19 = vadd.f32 %v109_v15, %v86_v18 }
  0x8b   :  { %116 = vst [vmem:[#allocation3] sm:$0xff] %v112_v17 }
  0x8c   :  { %117 = vst [vmem:[#allocation3 + $0x8] sm:$0xff] %v113_v19 }
  0x90   :  { %v74_v20 = vpop.f32.mrf.mxu0 }
  0x91   :  { %v114_v21 = vadd.f32 %v108_v14, %v74_v20  ;;  %v88_v22 = vpop.f32.mrf.mxu1 }
  0x92   :  { %v115_v23 = vadd.f32 %v109_v15, %v88_v22 }
  0x93   :  { %118 = vst [vmem:[#allocation3 + $0x10] sm:$0xff] %v114_v21 }
  0x94   :  { %119 = vst [vmem:[#allocation3 + $0x18] sm:$0xff] %v115_v23 }
  0x95   :  { %132 = dma.vmem_to_hbm [thread:$0]  %s125_s5, 512, %s127_s7, [#allocation4], %s195_s2, %s195_s2, %s196_s8  }
  0x96   :  { %192 = dma.done.wait [#allocation4], 512  }
  0x97   :  { %193 = vsyncadd [#allocation4], 4294966784 }
  0x98   :  { %137 = vsyncpa [#allocation4], 1 }

</bundles_post_ra>
